<compile_context>
chip_gen: v7x
topology: tpu7x:2x2x1
jax: 0.10.0
libtpu: 0.0.40
codegen_flags: <defaults>
</compile_context>

<pallas_src>
import functools
import math

import jax
import jax.numpy as jnp
from jax.experimental import pallas as pl
from jax.experimental.pallas import tpu as pltpu

LANE = 128
NEG_SLOPE = 0.2  # LeakyReLU slope used by dcgan_conv


def _pick_row_tile(m, cap=512):
    """Largest multiple-of-8 row tile <= cap that divides m, else the full extent."""
    t = min(cap, m)
    while t >= 8:
        if m % t == 0 and t % 8 == 0:
            return t
        t -= 8
    return m


# ----------------------------------------------------------------------------
# Pallas kernel 1: conv block as matmul  (patches @ W) * scale + bias, LeakyReLU
# ----------------------------------------------------------------------------
def _conv_block_kernel(p_ref, w_ref, s_ref, b_ref, o_ref):
    # p: (tm, K) bf16, w: (K, N) bf16, s/b: (1, N) f32, o: (tm, N) f32
    h = jnp.dot(p_ref[...], w_ref[...], preferred_element_type=jnp.float32)
    h = h * s_ref[...] + b_ref[...]                      # folded BatchNorm + conv bias
    o_ref[...] = jnp.where(h > 0, h, NEG_SLOPE * h)      # LeakyReLU(0.2) in f32


def _conv_block_matmul(patches, w, scale, bias):
    m, k = patches.shape
    n = w.shape[1]
    tm = _pick_row_tile(m)
    return pl.pallas_call(
        _conv_block_kernel,
        out_shape=jax.ShapeDtypeStruct((m, n), jnp.float32),
        grid_spec=pltpu.PrefetchScalarGridSpec(
            num_scalar_prefetch=0,
            grid=(m // tm,),
            in_specs=[
                pl.BlockSpec((tm, k), lambda i: (i, 0)),   # activation tile, pipelined
                pl.BlockSpec((k, n), lambda i: (0, 0)),    # weights VMEM-resident
                pl.BlockSpec((1, n), lambda i: (0, 0)),
                pl.BlockSpec((1, n), lambda i: (0, 0)),
            ],
            out_specs=pl.BlockSpec((tm, n), lambda i: (i, 0)),
        ),
        compiler_params=pltpu.CompilerParams(dimension_semantics=("parallel",)),
    )(patches, w, scale, bias)


# ----------------------------------------------------------------------------
# Pallas kernel 2: fused head = final conv (as linear) + BN affine + full MLP
# ----------------------------------------------------------------------------
def _make_head_kernel(n_fc):
    def kernel(*refs):
        x_ref = refs[0]
        out_ref = refs[-1]
        prm = refs[1:-1]
        # final Conv2d(C,dim,4,1,0) as a linear on the flattened 4x4 map, + BatchNorm
        h = jnp.dot(x_ref[...], prm[0][...], preferred_element_type=jnp.float32)
        h = h * prm[1][...] + prm[2][...]
        # fc stack: unrolled Python loop over heterogeneous layer shapes
        for i in range(n_fc):
            w = prm[3 + 2 * i][...]
            b = prm[4 + 2 * i][...]
            h = jnp.dot(h.astype(jnp.bfloat16), w,
                        preferred_element_type=jnp.float32) + b
            if i < n_fc - 1:
                h = jnp.maximum(h, 0.0)       # ReLU in f32
        out_ref[...] = h
    return kernel


def _head_call(flat_bf16, head_params):
    b, k = flat_bf16.shape
    n_fc = (len(head_params) - 3) // 2
    n_pad = head_params[-1].shape[1]          # lane-padded output width
    tb = _pick_row_tile(b)

    in_specs = [pl.BlockSpec((tb, k), lambda i: (i, 0))]
    in_specs += [pl.BlockSpec(p.shape, lambda i: (0, 0)) for p in head_params]

    return pl.pallas_call(
        _make_head_kernel(n_fc),
        out_shape=jax.ShapeDtypeStruct((b, n_pad), jnp.float32),
        grid_spec=pltpu.PrefetchScalarGridSpec(
            num_scalar_prefetch=0,
            grid=(b // tb,),
            in_specs=in_specs,
            out_specs=pl.BlockSpec((tb, n_pad), lambda i: (i, 0)),
        ),
        compiler_params=pltpu.CompilerParams(dimension_semantics=("parallel",)),
    )(flat_bf16, *head_params)


# ----------------------------------------------------------------------------
# Plain-JAX glue: im2col for the strided 4x4 convs (torch (c, kh, kw) ordering)
# ----------------------------------------------------------------------------
def _im2col(x, kh, kw, stride, pad):
    b, c, h, w = x.shape
    xp = jnp.pad(x, ((0, 0), (0, 0), (pad, pad), (pad, pad)))
    ho = (h + 2 * pad - kh) // stride + 1
    wo = (w + 2 * pad - kw) // stride + 1
    cols = []
    for p in range(kh):
        for q in range(kw):
            cols.append(xp[:, :, p:p + stride * ho:stride, q:q + stride * wo:stride])
    cols = jnp.stack(cols, axis=0).reshape(kh, kw, b, c, ho, wo)
    cols = cols.transpose(2, 4, 5, 3, 0, 1)                 # (B, Ho, Wo, C, kh, kw)
    return cols.reshape(b * ho * wo, c * kh * kw), ho, wo


# ----------------------------------------------------------------------------
# Forward pass
# ----------------------------------------------------------------------------
@jax.jit
def net_forward(x, params):
    """Pallas implementation of net.forward(x)."""
    h = x
    for (w, scale, bias) in params["dcgan"]:
        bsz = h.shape[0]
        nout = w.shape[1]
        patches, ho, wo = _im2col(h, 4, 4, stride=2, pad=1)
        out = _conv_block_matmul(patches.astype(jnp.bfloat16), w, scale, bias)
        h = out.reshape(bsz, ho, wo, nout).transpose(0, 3, 1, 2)   # back to NCHW

    # final 4x4 valid conv == linear on the flattened (c, p, q) feature map
    bsz = h.shape[0]
    flat = h.reshape(bsz, -1).astype(jnp.bfloat16)

    head = params["head"]
    output_dim = head[-1].shape[1]
    # lane-dense final output: pad last fc layer out to a multiple of 128 lanes
    n_pad = ((output_dim + LANE - 1) // LANE) * LANE
    w_last = jnp.pad(head[-2], ((0, 0), (0, n_pad - output_dim)))
    b_last = jnp.pad(head[-1], ((0, 0), (0, n_pad - output_dim)))
    head_params = list(head[:-2]) + [w_last, b_last]

    out_padded = _head_call(flat, head_params)
    return out_padded[:, :output_dim]


# ----------------------------------------------------------------------------
# Parameter construction (shapes match the torch module; matmul-ready layout)
# ----------------------------------------------------------------------------
def init_net_params(key, nc, size, dim, hidden_dim, output_dim, n_layer):
    nf = 64
    eps = 1e-5
    n_conv = int(math.log2(size)) - 1          # matches int(np.log(size)/np.log(2)) - 1

    def linear_init(k, fan_in, shape_w, shape_b):
        kw, kb = jax.random.split(k)
        bound = 1.0 / math.sqrt(fan_in)
        w = jax.random.uniform(kw, shape_w, jnp.float32, -bound, bound)
        b = jax.random.uniform(kb, shape_b, jnp.float32, -bound, bound)
        return w, b

    def bn_fold(k, cout, conv_bias):
        kg, kb = jax.random.split(k)
        gamma = jax.random.uniform(kg, (1, cout), jnp.float32, 0.5, 1.5)
        beta = jax.random.uniform(kb, (1, cout), jnp.float32, -0.1, 0.1)
        s = gamma / jnp.sqrt(1.0 + eps)        # running mean=0, var=1 (fresh module, eval)
        return s, conv_bias * s + beta

    # strided dcgan_conv blocks
    chans = [(nc, nf)]
    for i in range(max(0, n_conv - 2)):
        chans.append((min(2 ** i, 8) * nf, min(2 ** (i + 1), 8) * nf))

    dcgan = []
    for cin, cout in chans:
        key, k1, k2 = jax.random.split(key, 3)
        w, b = linear_init(k1, cin * 16, (cin * 16, cout), (1, cout))
        s, bias = bn_fold(k2, cout, b)
        dcgan.append((w.astype(jnp.bfloat16), s, bias))

    # final Conv2d(C_last, dim, 4, 1, 0) + BatchNorm2d(dim) -> fused into the head kernel
    c_last = chans[-1][1]
    key, k1, k2 = jax.random.split(key, 3)
    w3, b3 = linear_init(k1, c_last * 16, (c_last * 16, dim), (1, dim))
    s3, bias3 = bn_fold(k2, dim, b3)
    head = [w3.astype(jnp.bfloat16), s3, bias3]

    # fc stack
    fcs = [(dim, hidden_dim)] + [(hidden_dim, hidden_dim)] * n_layer + \
          [(hidden_dim, output_dim)]
    for fan_in, fan_out in fcs:
        key, k1 = jax.random.split(key)
        w, b = linear_init(k1, fan_in, (fan_in, fan_out), (1, fan_out))
        head += [w.astype(jnp.bfloat16), b]

    return {"dcgan": dcgan, "head": head}


# ----------------------------------------------------------------------------
# Pure-JAX reference (lax.conv path) with the same bf16-input / f32-accum policy
# ----------------------------------------------------------------------------
def reference_forward(x, params):
    h = x
    for (w, scale, bias) in params["dcgan"]:
        cin = h.shape[1]
        cout = w.shape[1]
        w_oihw = jnp.transpose(w).reshape(cout, cin, 4, 4)   # torch OIHW layout
        z = jax.lax.conv_general_dilated(
            h.astype(jnp.bfloat16), w_oihw,
            window_strides=(2, 2), padding=((1, 1), (1, 1)),
            dimension_numbers=("NCHW", "OIHW", "NCHW"),
            preferred_element_type=jnp.float32)
        z = z * scale[0, :, None, None] + bias[0, :, None, None]
        h = jnp.where(z > 0, z, NEG_SLOPE * z)

    flat = h.reshape(h.shape[0], -1).astype(jnp.bfloat16)
    head = params["head"]
    z = jnp.dot(flat, head[0], preferred_element_type=jnp.float32)
    z = z * head[1] + head[2]
    n_fc = (len(head) - 3) // 2
    for i in range(n_fc):
        w, b = head[3 + 2 * i], head[4 + 2 * i]
        z = jnp.dot(z.astype(jnp.bfloat16), w, preferred_element_type=jnp.float32) + b
        if i < n_fc - 1:
            z = jnp.maximum(z, 0.0)
    return z


if __name__ == "__main__":
    # net(nc, size, dim, hidden_dim, output_dim, n_layer) at small shapes
    B, nc, size = 2, 3, 16
    dim, hidden_dim, output_dim, n_layer = 32, 32, 8, 2

    key = jax.random.PRNGKey(0)
    kx, kp = jax.random.split(key)
    x = jax.random.normal(kx, (B, nc, size, size), jnp.float32)
    params = init_net_params(kp, nc, size, dim, hidden_dim, output_dim, n_layer)

    out = net_forward(x, params)
    out = jax.block_until_ready(out)

    ref = reference_forward(x, params)
    assert out.shape == (B, output_dim), out.shape
    assert jnp.allclose(out, ref, atol=2e-2, rtol=2e-2), \
        float(jnp.max(jnp.abs(out - ref)))

    print("KERNEL_OK")
</pallas_src>

<mosaic_0001>
module attributes {stable_mosaic.version = 11 : i64} {
  func.func @_conv_block_kernel(%arg0: i32, %arg1: memref<128x48xbf16, #tpu.memory_space<vmem>>, %arg2: memref<48x64xbf16, #tpu.memory_space<vmem>>, %arg3: memref<1x64xf32, #tpu.memory_space<vmem>>, %arg4: memref<1x64xf32, #tpu.memory_space<vmem>>, %arg5: memref<128x64xf32, #tpu.memory_space<vmem>>) attributes {dimension_semantics = [#tpu.dimension_semantics<parallel>], iteration_bounds = array<i64: 1>, scalar_prefetch = 0 : i64, scratch_operands = 0 : i64, tpu.core_type = #tpu.core_type<tc>, window_params = [{transform_indices = @transform_0, window_bounds = array<i64: 128, 48>}, {pipeline_mode = #tpu.pipeline_mode<synchronous>, transform_indices = @transform_1, window_bounds = array<i64: 48, 64>}, {pipeline_mode = #tpu.pipeline_mode<synchronous>, transform_indices = @transform_2, window_bounds = array<i64: 1, 64>}, {pipeline_mode = #tpu.pipeline_mode<synchronous>, transform_indices = @transform_3, window_bounds = array<i64: 1, 64>}, {transform_indices = @transform_4, window_bounds = array<i64: 128, 64>}]} {
    %c0 = arith.constant 0 : index
    %c0_0 = arith.constant 0 : index
    %0 = vector.load %arg1[%c0, %c0_0] : memref<128x48xbf16, #tpu.memory_space<vmem>>, vector<128x48xbf16>
    %c0_1 = arith.constant 0 : index
    %c0_2 = arith.constant 0 : index
    %1 = vector.load %arg2[%c0_1, %c0_2] : memref<48x64xbf16, #tpu.memory_space<vmem>>, vector<48x64xbf16>
    %cst = arith.constant dense<0.000000e+00> : vector<128x64xf32>
    %2 = tpu.matmul %0, %1, %cst {dimension_numbers = #tpu.dot_dimension_numbers<[1], [0], [0], [1], [0, 0, 1, 1], [], []>} : vector<128x48xbf16>, vector<48x64xbf16>, vector<128x64xf32> -> vector<128x64xf32>
    %c0_3 = arith.constant 0 : index
    %c0_4 = arith.constant 0 : index
    %3 = vector.load %arg3[%c0_3, %c0_4] : memref<1x64xf32, #tpu.memory_space<vmem>>, vector<1x64xf32>
    %4 = vector.broadcast %3 : vector<1x64xf32> to vector<128x64xf32>
    %5 = arith.mulf %2, %4 : vector<128x64xf32>
    %c0_5 = arith.constant 0 : index
    %c0_6 = arith.constant 0 : index
    %6 = vector.load %arg4[%c0_5, %c0_6] : memref<1x64xf32, #tpu.memory_space<vmem>>, vector<1x64xf32>
    %7 = vector.broadcast %6 : vector<1x64xf32> to vector<128x64xf32>
    %8 = arith.addf %5, %7 : vector<128x64xf32>
    %cst_7 = arith.constant 0.000000e+00 : f32
    %9 = vector.broadcast %cst_7 : f32 to vector<128x64xf32>
    %10 = arith.cmpf ogt, %8, %9 : vector<128x64xf32>
    %cst_8 = arith.constant 2.000000e-01 : f32
    %11 = vector.broadcast %cst_8 : f32 to vector<128x64xf32>
    %12 = arith.mulf %11, %8 : vector<128x64xf32>
    %13 = arith.select %10, %8, %12 : vector<128x64xi1>, vector<128x64xf32>
    %c0_9 = arith.constant 0 : index
    %c0_10 = arith.constant 0 : index
    %14 = vector.load %arg5[%c0_9, %c0_10] : memref<128x64xf32, #tpu.memory_space<vmem>>, vector<128x64xf32>
    tpu.vector_store %arg5[%c0_9, %c0_10], %13 {strides = array<i32>} : memref<128x64xf32, #tpu.memory_space<vmem>>, vector<128x64xf32>,
    return
  }
  func.func @transform_0(%arg0: i32) -> (i32, i32) {
    %c0_i32 = arith.constant 0 : i32
    %c0_i32_0 = arith.constant 0 : i32
    return %arg0, %c0_i32 : i32, i32
  }
  func.func @transform_1(%arg0: i32) -> (i32, i32) {
    %c0_i32 = arith.constant 0 : i32
    %c0_i32_0 = arith.constant 0 : i32
    %c0_i32_1 = arith.constant 0 : i32
    return %c0_i32, %c0_i32_0 : i32, i32
  }
  func.func @transform_2(%arg0: i32) -> (i32, i32) {
    %c0_i32 = arith.constant 0 : i32
    %c0_i32_0 = arith.constant 0 : i32
    %c0_i32_1 = arith.constant 0 : i32
    return %c0_i32, %c0_i32_0 : i32, i32
  }
  func.func @transform_3(%arg0: i32) -> (i32, i32) {
    %c0_i32 = arith.constant 0 : i32
    %c0_i32_0 = arith.constant 0 : i32
    %c0_i32_1 = arith.constant 0 : i32
    return %c0_i32, %c0_i32_0 : i32, i32
  }
  func.func @transform_4(%arg0: i32) -> (i32, i32) {
    %c0_i32 = arith.constant 0 : i32
    %c0_i32_0 = arith.constant 0 : i32
    return %arg0, %c0_i32 : i32, i32
  }
}

module attributes {stable_mosaic.version = 11 : i64} {
  func.func @_conv_block_kernel(%arg0: i32, %arg1: memref<32x1024xbf16, #tpu.memory_space<vmem>>, %arg2: memref<1024x128xbf16, #tpu.memory_space<vmem>>, %arg3: memref<1x128xf32, #tpu.memory_space<vmem>>, %arg4: memref<1x128xf32, #tpu.memory_space<vmem>>, %arg5: memref<32x128xf32, #tpu.memory_space<vmem>>) attributes {dimension_semantics = [#tpu.dimension_semantics<parallel>], iteration_bounds = array<i64: 1>, scalar_prefetch = 0 : i64, scratch_operands = 0 : i64, tpu.core_type = #tpu.core_type<tc>, window_params = [{transform_indices = @transform_0, window_bounds = array<i64: 32, 1024>}, {pipeline_mode = #tpu.pipeline_mode<synchronous>, transform_indices = @transform_1, window_bounds = array<i64: 1024, 128>}, {pipeline_mode = #tpu.pipeline_mode<synchronous>, transform_indices = @transform_2, window_bounds = array<i64: 1, 128>}, {pipeline_mode = #tpu.pipeline_mode<synchronous>, transform_indices = @transform_3, window_bounds = array<i64: 1, 128>}, {transform_indices = @transform_4, window_bounds = array<i64: 32, 128>}]} {
    %c0 = arith.constant 0 : index
    %c0_0 = arith.constant 0 : index
    %0 = vector.load %arg1[%c0, %c0_0] : memref<32x1024xbf16, #tpu.memory_space<vmem>>, vector<32x1024xbf16>
    %c0_1 = arith.constant 0 : index
    %c0_2 = arith.constant 0 : index
    %1 = vector.load %arg2[%c0_1, %c0_2] : memref<1024x128xbf16, #tpu.memory_space<vmem>>, vector<1024x128xbf16>
    %cst = arith.constant dense<0.000000e+00> : vector<32x128xf32>
    %2 = tpu.matmul %0, %1, %cst {dimension_numbers = #tpu.dot_dimension_numbers<[1], [0], [0], [1], [0, 0, 1, 1], [], []>} : vector<32x1024xbf16>, vector<1024x128xbf16>, vector<32x128xf32> -> vector<32x128xf32>
    %c0_3 = arith.constant 0 : index
    %c0_4 = arith.constant 0 : index
    %3 = vector.load %arg3[%c0_3, %c0_4] : memref<1x128xf32, #tpu.memory_space<vmem>>, vector<1x128xf32>
    %4 = vector.broadcast %3 : vector<1x128xf32> to vector<32x128xf32>
    %5 = arith.mulf %2, %4 : vector<32x128xf32>
    %c0_5 = arith.constant 0 : index
    %c0_6 = arith.constant 0 : index
    %6 = vector.load %arg4[%c0_5, %c0_6] : memref<1x128xf32, #tpu.memory_space<vmem>>, vector<1x128xf32>
    %7 = vector.broadcast %6 : vector<1x128xf32> to vector<32x128xf32>
    %8 = arith.addf %5, %7 : vector<32x128xf32>
    %cst_7 = arith.constant 0.000000e+00 : f32
    %9 = vector.broadcast %cst_7 : f32 to vector<32x128xf32>
    %10 = arith.cmpf ogt, %8, %9 : vector<32x128xf32>
    %cst_8 = arith.constant 2.000000e-01 : f32
    %11 = vector.broadcast %cst_8 : f32 to vector<32x128xf32>
    %12 = arith.mulf %11, %8 : vector<32x128xf32>
    %13 = arith.select %10, %8, %12 : vector<32x128xi1>, vector<32x128xf32>
    %c0_9 = arith.constant 0 : index
    %c0_10 = arith.constant 0 : index
    %14 = vector.load %arg5[%c0_9, %c0_10] : memref<32x128xf32, #tpu.memory_space<vmem>>, vector<32x128xf32>
    tpu.vector_store %arg5[%c0_9, %c0_10], %13 {strides = array<i32>} : memref<32x128xf32, #tpu.memory_space<vmem>>, vector<32x128xf32>,
    return
  }
  func.func @transform_0(%arg0: i32) -> (i32, i32) {
    %c0_i32 = arith.constant 0 : i32
    %c0_i32_0 = arith.constant 0 : i32
    return %arg0, %c0_i32 : i32, i32
  }
  func.func @transform_1(%arg0: i32) -> (i32, i32) {
    %c0_i32 = arith.constant 0 : i32
    %c0_i32_0 = arith.constant 0 : i32
    %c0_i32_1 = arith.constant 0 : i32
    return %c0_i32, %c0_i32_0 : i32, i32
  }
  func.func @transform_2(%arg0: i32) -> (i32, i32) {
    %c0_i32 = arith.constant 0 : i32
    %c0_i32_0 = arith.constant 0 : i32
    %c0_i32_1 = arith.constant 0 : i32
    return %c0_i32, %c0_i32_0 : i32, i32
  }
  func.func @transform_3(%arg0: i32) -> (i32, i32) {
    %c0_i32 = arith.constant 0 : i32
    %c0_i32_0 = arith.constant 0 : i32
    %c0_i32_1 = arith.constant 0 : i32
    return %c0_i32, %c0_i32_0 : i32, i32
  }
  func.func @transform_4(%arg0: i32) -> (i32, i32) {
    %c0_i32 = arith.constant 0 : i32
    %c0_i32_0 = arith.constant 0 : i32
    return %arg0, %c0_i32 : i32, i32
  }
}

module attributes {stable_mosaic.version = 11 : i64} {
  func.func @kernel(%arg0: i32, %arg1: memref<2x2048xbf16, #tpu.memory_space<vmem>>, %arg2: memref<2048x32xbf16, #tpu.memory_space<vmem>>, %arg3: memref<1x32xf32, #tpu.memory_space<vmem>>, %arg4: memref<1x32xf32, #tpu.memory_space<vmem>>, %arg5: memref<32x32xbf16, #tpu.memory_space<vmem>>, %arg6: memref<1x32xf32, #tpu.memory_space<vmem>>, %arg7: memref<32x32xbf16, #tpu.memory_space<vmem>>, %arg8: memref<1x32xf32, #tpu.memory_space<vmem>>, %arg9: memref<32x32xbf16, #tpu.memory_space<vmem>>, %arg10: memref<1x32xf32, #tpu.memory_space<vmem>>, %arg11: memref<32x128xbf16, #tpu.memory_space<vmem>>, %arg12: memref<1x128xf32, #tpu.memory_space<vmem>>, %arg13: memref<2x128xf32, #tpu.memory_space<vmem>>) attributes {dimension_semantics = [#tpu.dimension_semantics<parallel>], iteration_bounds = array<i64: 1>, scalar_prefetch = 0 : i64, scratch_operands = 0 : i64, tpu.core_type = #tpu.core_type<tc>, window_params = [{transform_indices = @transform_0, window_bounds = array<i64: 2, 2048>}, {pipeline_mode = #tpu.pipeline_mode<synchronous>, transform_indices = @transform_1, window_bounds = array<i64: 2048, 32>}, {pipeline_mode = #tpu.pipeline_mode<synchronous>, transform_indices = @transform_2, window_bounds = array<i64: 1, 32>}, {pipeline_mode = #tpu.pipeline_mode<synchronous>, transform_indices = @transform_3, window_bounds = array<i64: 1, 32>}, {pipeline_mode = #tpu.pipeline_mode<synchronous>, transform_indices = @transform_4, window_bounds = array<i64: 32, 32>}, {pipeline_mode = #tpu.pipeline_mode<synchronous>, transform_indices = @transform_5, window_bounds = array<i64: 1, 32>}, {pipeline_mode = #tpu.pipeline_mode<synchronous>, transform_indices = @transform_6, window_bounds = array<i64: 32, 32>}, {pipeline_mode = #tpu.pipeline_mode<synchronous>, transform_indices = @transform_7, window_bounds = array<i64: 1, 32>}, {pipeline_mode = #tpu.pipeline_mode<synchronous>, transform_indices = @transform_8, window_bounds = array<i64: 32, 32>}, {pipeline_mode = #tpu.pipeline_mode<synchronous>, transform_indices = @transform_9, window_bounds = array<i64: 1, 32>}, {pipeline_mode = #tpu.pipeline_mode<synchronous>, transform_indices = @transform_10, window_bounds = array<i64: 32, 128>}, {pipeline_mode = #tpu.pipeline_mode<synchronous>, transform_indices = @transform_11, window_bounds = array<i64: 1, 128>}, {transform_indices = @transform_12, window_bounds = array<i64: 2, 128>}]} {
    %c0 = arith.constant 0 : index
    %c0_0 = arith.constant 0 : index
    %0 = vector.load %arg1[%c0, %c0_0] : memref<2x2048xbf16, #tpu.memory_space<vmem>>, vector<2x2048xbf16>
    %c0_1 = arith.constant 0 : index
    %c0_2 = arith.constant 0 : index
    %1 = vector.load %arg2[%c0_1, %c0_2] : memref<2048x32xbf16, #tpu.memory_space<vmem>>, vector<2048x32xbf16>
    %cst = arith.constant dense<0.000000e+00> : vector<2x32xf32>
    %2 = tpu.matmul %0, %1, %cst {dimension_numbers = #tpu.dot_dimension_numbers<[1], [0], [0], [1], [0, 0, 1, 1], [], []>} : vector<2x2048xbf16>, vector<2048x32xbf16>, vector<2x32xf32> -> vector<2x32xf32>
    %c0_3 = arith.constant 0 : index
    %c0_4 = arith.constant 0 : index
    %3 = vector.load %arg3[%c0_3, %c0_4] : memref<1x32xf32, #tpu.memory_space<vmem>>, vector<1x32xf32>
    %4 = vector.broadcast %3 : vector<1x32xf32> to vector<2x32xf32>
    %5 = arith.mulf %2, %4 : vector<2x32xf32>
    %c0_5 = arith.constant 0 : index
    %c0_6 = arith.constant 0 : index
    %6 = vector.load %arg4[%c0_5, %c0_6] : memref<1x32xf32, #tpu.memory_space<vmem>>, vector<1x32xf32>
    %7 = vector.broadcast %6 : vector<1x32xf32> to vector<2x32xf32>
    %8 = arith.addf %5, %7 : vector<2x32xf32>
    %c0_7 = arith.constant 0 : index
    %c0_8 = arith.constant 0 : index
    %9 = vector.load %arg5[%c0_7, %c0_8] : memref<32x32xbf16, #tpu.memory_space<vmem>>, vector<32x32xbf16>
    %c0_9 = arith.constant 0 : index
    %c0_10 = arith.constant 0 : index
    %10 = vector.load %arg6[%c0_9, %c0_10] : memref<1x32xf32, #tpu.memory_space<vmem>>, vector<1x32xf32>
    %11 = arith.truncf %8 : vector<2x32xf32> to vector<2x32xbf16>
    %cst_11 = arith.constant dense<0.000000e+00> : vector<2x32xf32>
    %12 = tpu.matmul %11, %9, %cst_11 {dimension_numbers = #tpu.dot_dimension_numbers<[1], [0], [0], [1], [0, 0, 1, 1], [], []>} : vector<2x32xbf16>, vector<32x32xbf16>, vector<2x32xf32> -> vector<2x32xf32>
    %13 = vector.broadcast %10 : vector<1x32xf32> to vector<2x32xf32>
    %14 = arith.addf %12, %13 : vector<2x32xf32>
    %cst_12 = arith.constant 0.000000e+00 : f32
    %15 = vector.broadcast %cst_12 : f32 to vector<2x32xf32>
    %16 = arith.maximumf %14, %15 : vector<2x32xf32>
    %c0_13 = arith.constant 0 : index
    %c0_14 = arith.constant 0 : index
    %17 = vector.load %arg7[%c0_13, %c0_14] : memref<32x32xbf16, #tpu.memory_space<vmem>>, vector<32x32xbf16>
    %c0_15 = arith.constant 0 : index
    %c0_16 = arith.constant 0 : index
    %18 = vector.load %arg8[%c0_15, %c0_16] : memref<1x32xf32, #tpu.memory_space<vmem>>, vector<1x32xf32>
    %19 = arith.truncf %16 : vector<2x32xf32> to vector<2x32xbf16>
    %cst_17 = arith.constant dense<0.000000e+00> : vector<2x32xf32>
    %20 = tpu.matmul %19, %17, %cst_17 {dimension_numbers = #tpu.dot_dimension_numbers<[1], [0], [0], [1], [0, 0, 1, 1], [], []>} : vector<2x32xbf16>, vector<32x32xbf16>, vector<2x32xf32> -> vector<2x32xf32>
    %21 = vector.broadcast %18 : vector<1x32xf32> to vector<2x32xf32>
    %22 = arith.addf %20, %21 : vector<2x32xf32>
    %cst_18 = arith.constant 0.000000e+00 : f32
    %23 = vector.broadcast %cst_18 : f32 to vector<2x32xf32>
    %24 = arith.maximumf %22, %23 : vector<2x32xf32>
    %c0_19 = arith.constant 0 : index
    %c0_20 = arith.constant 0 : index
    %25 = vector.load %arg9[%c0_19, %c0_20] : memref<32x32xbf16, #tpu.memory_space<vmem>>, vector<32x32xbf16>
    %c0_21 = arith.constant 0 : index
    %c0_22 = arith.constant 0 : index
    %26 = vector.load %arg10[%c0_21, %c0_22] : memref<1x32xf32, #tpu.memory_space<vmem>>, vector<1x32xf32>
    %27 = arith.truncf %24 : vector<2x32xf32> to vector<2x32xbf16>
    %cst_23 = arith.constant dense<0.000000e+00> : vector<2x32xf32>
    %28 = tpu.matmul %27, %25, %cst_23 {dimension_numbers = #tpu.dot_dimension_numbers<[1], [0], [0], [1], [0, 0, 1, 1], [], []>} : vector<2x32xbf16>, vector<32x32xbf16>, vector<2x32xf32> -> vector<2x32xf32>
    %29 = vector.broadcast %26 : vector<1x32xf32> to vector<2x32xf32>
    %30 = arith.addf %28, %29 : vector<2x32xf32>
    %cst_24 = arith.constant 0.000000e+00 : f32
    %31 = vector.broadcast %cst_24 : f32 to vector<2x32xf32>
    %32 = arith.maximumf %30, %31 : vector<2x32xf32>
    %c0_25 = arith.constant 0 : index
    %c0_26 = arith.constant 0 : index
    %33 = vector.load %arg11[%c0_25, %c0_26] : memref<32x128xbf16, #tpu.memory_space<vmem>>, vector<32x128xbf16>
    %c0_27 = arith.constant 0 : index
    %c0_28 = arith.constant 0 : index
    %34 = vector.load %arg12[%c0_27, %c0_28] : memref<1x128xf32, #tpu.memory_space<vmem>>, vector<1x128xf32>
    %35 = arith.truncf %32 : vector<2x32xf32> to vector<2x32xbf16>
    %cst_29 = arith.constant dense<0.000000e+00> : vector<2x128xf32>
    %36 = tpu.matmul %35, %33, %cst_29 {dimension_numbers = #tpu.dot_dimension_numbers<[1], [0], [0], [1], [0, 0, 1, 1], [], []>} : vector<2x32xbf16>, vector<32x128xbf16>, vector<2x128xf32> -> vector<2x128xf32>
    %37 = vector.broadcast %34 : vector<1x128xf32> to vector<2x128xf32>
    %38 = arith.addf %36, %37 : vector<2x128xf32>
    %c0_30 = arith.constant 0 : index
    %c0_31 = arith.constant 0 : index
    %39 = vector.load %arg13[%c0_30, %c0_31] : memref<2x128xf32, #tpu.memory_space<vmem>>, vector<2x128xf32>
    tpu.vector_store %arg13[%c0_30, %c0_31], %38 {strides = array<i32>} : memref<2x128xf32, #tpu.memory_space<vmem>>, vector<2x128xf32>,
    return
  }
  func.func @transform_0(%arg0: i32) -> (i32, i32) {
    %c0_i32 = arith.constant 0 : i32
    %c0_i32_0 = arith.constant 0 : i32
    return %arg0, %c0_i32 : i32, i32
  }
  func.func @transform_1(%arg0: i32) -> (i32, i32) {
    %c0_i32 = arith.constant 0 : i32
    %c0_i32_0 = arith.constant 0 : i32
    %c0_i32_1 = arith.constant 0 : i32
    return %c0_i32, %c0_i32_0 : i32, i32
  }
  func.func @transform_2(%arg0: i32) -> (i32, i32) {
    %c0_i32 = arith.constant 0 : i32
    %c0_i32_0 = arith.constant 0 : i32
    %c0_i32_1 = arith.constant 0 : i32
    return %c0_i32, %c0_i32_0 : i32, i32
  }
  func.func @transform_3(%arg0: i32) -> (i32, i32) {
    %c0_i32 = arith.constant 0 : i32
    %c0_i32_0 = arith.constant 0 : i32
    %c0_i32_1 = arith.constant 0 : i32
    return %c0_i32, %c0_i32_0 : i32, i32
  }
  func.func @transform_4(%arg0: i32) -> (i32, i32) {
    %c0_i32 = arith.constant 0 : i32
    %c0_i32_0 = arith.constant 0 : i32
    %c0_i32_1 = arith.constant 0 : i32
    return %c0_i32, %c0_i32_0 : i32, i32
  }
  func.func @transform_5(%arg0: i32) -> (i32, i32) {
    %c0_i32 = arith.constant 0 : i32
    %c0_i32_0 = arith.constant 0 : i32
    %c0_i32_1 = arith.constant 0 : i32
    return %c0_i32, %c0_i32_0 : i32, i32
  }
  func.func @transform_6(%arg0: i32) -> (i32, i32) {
    %c0_i32 = arith.constant 0 : i32
    %c0_i32_0 = arith.constant 0 : i32
    %c0_i32_1 = arith.constant 0 : i32
    return %c0_i32, %c0_i32_0 : i32, i32
  }
  func.func @transform_7(%arg0: i32) -> (i32, i32) {
    %c0_i32 = arith.constant 0 : i32
    %c0_i32_0 = arith.constant 0 : i32
    %c0_i32_1 = arith.constant 0 : i32
    return %c0_i32, %c0_i32_0 : i32, i32
  }
  func.func @transform_8(%arg0: i32) -> (i32, i32) {
    %c0_i32 = arith.constant 0 : i32
    %c0_i32_0 = arith.constant 0 : i32
    %c0_i32_1 = arith.constant 0 : i32
    return %c0_i32, %c0_i32_0 : i32, i32
  }
  func.func @transform_9(%arg0: i32) -> (i32, i32) {
    %c0_i32 = arith.constant 0 : i32
    %c0_i32_0 = arith.constant 0 : i32
    %c0_i32_1 = arith.constant 0 : i32
    return %c0_i32, %c0_i32_0 : i32, i32
  }
  func.func @transform_10(%arg0: i32) -> (i32, i32) {
    %c0_i32 = arith.constant 0 : i32
    %c0_i32_0 = arith.constant 0 : i32
    %c0_i32_1 = arith.constant 0 : i32
    return %c0_i32, %c0_i32_0 : i32, i32
  }
  func.func @transform_11(%arg0: i32) -> (i32, i32) {
    %c0_i32 = arith.constant 0 : i32
    %c0_i32_0 = arith.constant 0 : i32
    %c0_i32_1 = arith.constant 0 : i32
    return %c0_i32, %c0_i32_0 : i32, i32
  }
  func.func @transform_12(%arg0: i32) -> (i32, i32) {
    %c0_i32 = arith.constant 0 : i32
    %c0_i32_0 = arith.constant 0 : i32
    return %arg0, %c0_i32 : i32, i32
  }
}

</mosaic_0001>

<bundles_post_ra>
// kernel: net_forward.3
= control target key start
LH: loop header
LB: loop body
LE: loop exit
PB: predicated region body
PF: predicated region fallthrough
CT: control target
= control target key end

     0   :  { %9 = vsyncpa [#allocation3], 0  ;;  %s725_s0 = inlined_call_operand.vmem [shape: bf16[128,48], index: 0, kind: input, shape index: {}]   ;;  %s726_s1 = inlined_call_operand.hbm [shape: bf16[48,64], index: 1, kind: input, shape index: {}]   ;;  %s727_s2 = inlined_call_operand.hbm [shape: f32[1,64], index: 2, kind: input, shape index: {}]   ;;  %s728_s3 = inlined_call_operand.hbm [shape: f32[1,64], index: 3, kind: input, shape index: {}]   ;;  %s729_s4 = inlined_call_operand.vmem [shape: f32[128,64], index: 4, kind: output, shape index: {}]  }
   0x1   :  { %10 = vsyncpa [#allocation5], 0  ;;  %s520_s15 = smov [#allocation4]   ;;  %s521_s17 = smov [#allocation2]  }
   0x2   :  { %s31_s16 = sshll.u32 %s520_s15, 4  ;;  %s18_s18 = sshll.u32 %s521_s17, 4  ;;  %s32_s16 = int_to_ptr.vmem [resolvable:$true] %s31_s16  ;;  %s550_s18 = int_to_ptr.vmem [resolvable:$true] %s18_s18 }
   0x3   :  { %s450_s21 = scalar_lea.hbm %s727_s2, 16 }
   0x4   :  { %p451_p0 = scmp.ne.s32.totalorder %s727_s2, %s450_s21  ;;  %p454_p1 = scmp.lt.u32.totalorder %s450_s21, %s727_s2 }
   0x6   :  { %p456_p2 = pnand %p454_p1, %p451_p0 }
   0x8   :  { %459 = shalt.err (!%p456_p2)
}
   0x9   :  { %s460_s26 = scalar_lea.vmem %s32_s16, 16  ;;  %s464_s27 = scalar_lea.vmem %s32_s16, 32 }
   0xa   :  { %p461_p3 = scmp.ne.s32.totalorder %s32_s16, %s460_s26  ;;  %p465_p4 = scmp.lt.s32.totalorder %s32_s16, %s32_s16 }
   0xb   :  { %p466_p5 = scmp.lt.s32.totalorder %s464_s27, %s460_s26 }
   0xd   :  { %p467_p6 = por %p466_p5, %p465_p4 }
   0xf   :  { %p468_p7 = pnand %p467_p6, %p461_p3 }
  0x11   :  { %471 = shalt.err (!%p468_p7)
}
  0x12   :  { %34 = dma.hbm_to_vmem [thread:$0]  %s727_s2, 16, %s32_s16, [#allocation5]  }
  0x13   :  { %s472_s6 = scalar_lea.hbm %s726_s1, 384 }
  0x14   :  { %p473_p8 = scmp.ne.s32.totalorder %s726_s1, %s472_s6  ;;  %p476_p9 = scmp.lt.u32.totalorder %s472_s6, %s726_s1 }
  0x16   :  { %p478_p10 = pnand %p476_p9, %p473_p8 }
  0x18   :  { %481 = shalt.err (!%p478_p10)
}
  0x19   :  { %s482_s11 = scalar_lea.vmem %s550_s18, 384  ;;  %p487_p12 = scmp.lt.s32.totalorder %s550_s18, %s550_s18 }
  0x1a   :  { %p483_p11 = scmp.ne.s32.totalorder %s550_s18, %s482_s11  ;;  %p488_p13 = scmp.lt.s32.totalorder %s482_s11, %s482_s11 }
  0x1c   :  { %p489_p0 = por %p488_p13, %p487_p12 }
  0x1e   :  { %p490_p1 = pnand %p489_p0, %p483_p11 }
  0x20   :  { %493 = shalt.err (!%p490_p1)
}
  0x21   :  { %s522_s2 = smov 64   ;;  %s523_s12 = smov 4  }
  0x22   :  { %24 = dma.hbm_to_vmem [thread:$0]  %s726_s1, 384, %s550_s18, [#allocation3], %s522_s2, %s522_s2, %s523_s12  }
  0x23   :  { %s524_s15 = smov [#allocation6]   ;;  %s494_s20 = scalar_lea.hbm %s728_s3, 16 }
  0x24   :  { %s41_s16 = sshll.u32 %s524_s15, 4  ;;  %p495_p2 = scmp.ne.s32.totalorder %s728_s3, %s494_s20  ;;  %s42_s16 = int_to_ptr.vmem [resolvable:$true] %s41_s16 }
  0x25   :  { %p498_p3 = scmp.lt.u32.totalorder %s494_s20, %s728_s3 }
  0x27   :  { %p500_p4 = pnand %p498_p3, %p495_p2 }
  0x29   :  { %503 = shalt.err (!%p500_p4)
}
  0x2a   :  { %s504_s25 = scalar_lea.vmem %s42_s16, 16  ;;  %s508_s1 = scalar_lea.vmem %s42_s16, 32 }
  0x2b   :  { %p505_p5 = scmp.ne.s32.totalorder %s42_s16, %s504_s25  ;;  %p509_p6 = scmp.lt.s32.totalorder %s42_s16, %s42_s16 }
  0x2c   :  { %p510_p7 = scmp.lt.s32.totalorder %s508_s1, %s504_s25 }
  0x2e   :  { %p511_p8 = por %p510_p7, %p509_p6 }
  0x30   :  { %p512_p9 = pnand %p511_p8, %p505_p5 }
  0x32   :  { %515 = shalt.err (!%p512_p9)
}
  0x33   :  { %44 = dma.hbm_to_vmem [thread:$0]  %s728_s3, 16, %s42_s16, [#allocation5]  }
  0x34   :  { %516 = dma.done.wait [#allocation3], 384  }
  0x35   :  { %517 = vsyncadd [#allocation3], 4294966912 }
  0x36   :  { %518 = dma.done.wait [#allocation5], 32  }
  0x37   :  { %519 = vsyncadd [#allocation5], 4294967264  ;;  %v439_v0 = vld [vmem:[#allocation2] sm:$0xff]   ;;  %v440_v1 = vld [vmem:[#allocation2 + $0x8] sm:$0xff]   ;;  %vm135_vm0 = vcmask 392192   ;;  %vm351_vm1 = vcmask 523264  }
  0x38   :  { %406 = vmatprep.subr.bf16.mxu0 %v439_v0  ;;  %428 = vmatprep.subr.bf16.mxu1 %v439_v0  ;;  %v441_v2 = vld [vmem:[#allocation2 + $0x10] sm:$0xff]   ;;  %v442_v3 = vld [vmem:[%s725_s0] sm:$0xff]   ;;  %v444_v5 = vld [vmem:[%s725_s0 + $0x8] sm:$0xff]  }
  0x39   :  { %407 = vmatpush3.bf16.msra.mxu0 %v439_v0  ;;  %431 = vmatpush3.bf16.msra.mxu1 %v439_v0  ;;  %v443_v4 = vld [vmem:[%s725_s0 + $0x20] sm:$0xff]   ;;  %v445_v6 = vld [vmem:[%s725_s0 + $0x28] sm:$0xff]   ;;  %v446_v7 = vld [vmem:[%s725_s0 + $0x10] sm:$0xff]  }
  0x3a   :  { %408 = vmatprep.subr.bf16.mxu0 %v440_v1  ;;  %429 = vmatprep.subr.bf16.mxu1 %v440_v1  ;;  %v447_v8 = vld [vmem:[%s725_s0 + $0x30] sm:$0xff]   ;;  %v448_v9 = vld [vmem:[%s725_s0 + $0x18] sm:$0xff]  }
  0x3b   :  { %412 = vmatprep.mubr.msk.bf16.mxu0 %vm135_vm0, %v442_v3  ;;  %420 = vmatprep.mubr.msk.bf16.mxu1 %vm135_vm0, %v443_v4  ;;  %v449_v10 = vld [vmem:[%s725_s0 + $0x38] sm:$0xff]  }
  0x3c   :  { %v625_v11 = vld [vmem:[#allocation4] ss:$0 sm:$0xff]  ;;  %v627_v13 = vld [vmem:[#allocation6] ss:$0 sm:$0xff] }
  0x3d   :  { %409 = vmatpush3.bf16.msra.mxu0 %v440_v1  ;;  %432 = vmatpush3.bf16.msra.mxu1 %v440_v1 }
  0x3e   :  { %410 = vmatprep.subr.bf16.mxu0 %v441_v2  ;;  %430 = vmatprep.subr.bf16.mxu1 %v441_v2 }
  0x41   :  { %411 = vmatpush3.bf16.msra.mxu0 %v441_v2  ;;  %433 = vmatpush3.bf16.msra.mxu1 %v441_v2 }
  0x44   :  { %413 = vmatmul.mubr.msk.bf16.vlgmr.msra.gmra.mrb[0].mxu0 %vm135_vm0, %v444_v5  ;;  %421 = vmatmul.mubr.msk.bf16.vlgmr.msra.gmra.mrb[0].mxu1 %vm135_vm0, %v445_v6 }
  0x45   :  { %416 = vmatprep.mubr.msk.bf16.mxu0 %vm135_vm0, %v446_v7  ;;  %424 = vmatprep.mubr.msk.bf16.mxu1 %vm135_vm0, %v447_v8 }
  0x4c   :  { %417 = vmatmul.mubr.msk.bf16.gmra.mrb[4].mxu0 %vm135_vm0, %v448_v9  ;;  %425 = vmatmul.mubr.msk.bf16.gmra.mrb[4].mxu1 %vm135_vm0, %v449_v10 }
 0x117   :  { %v414_v12 = vpop.f32.mrb[0].mxu0  ;;  %v422_v14 = vpop.f32.mrb[0].mxu1 }
 0x118   :  { %v266_v15 = vmul.f32 %v414_v12, %v625_v11  ;;  %v274_v16 = vmul.f32 %v422_v14, %v625_v11  ;;  %v194_v17 = vpop.f32.mrb[1].mxu0  ;;  %v226_v18 = vpop.f32.mrb[1].mxu1 }
 0x119   :  { %v264_v19 = vmul.f32 %v625_v11, %v194_v17  ;;  %v272_v20 = vmul.f32 %v625_v11, %v226_v18  ;;  %v415_v21 = vpop.f32.mrb[2].mxu0  ;;  %v423_v22 = vpop.f32.mrb[2].mxu1 }
 0x11a   :  { %v289_v23 = vadd.f32 %v627_v13, %v266_v15  ;;  %v297_v24 = vadd.f32 %v627_v13, %v274_v16  ;;  %v267_v25 = vmul.f32 %v415_v21, %v625_v11  ;;  %v275_v26 = vmul.f32 %v423_v22, %v625_v11  ;;  %v197_v27 = vpop.f32.mrb[3].mxu0  ;;  %v229_v28 = vpop.f32.mrb[3].mxu1 }
 0x11b   :  { %v287_v29 = vadd.f32 %v627_v13, %v264_v19  ;;  %v295_v30 = vadd.f32 %v627_v13, %v272_v20  ;;  %v265_v31 = vmul.f32 %v625_v11, %v197_v27  ;;  %v273_v32 = vmul.f32 %v625_v11, %v229_v28 }
 0x11c   :  { %vm305_vm2 = vcmp.gt.f32.partialorder %v289_v23, 0.0  ;;  %v321_v33 = vmul.f32 0.2, %v289_v23  ;;  %vm313_vm3 = vcmp.gt.f32.partialorder %v297_v24, 0.0  ;;  %v329_v34 = vmul.f32 0.2, %v297_v24 }
 0x11d   :  { %vm303_vm4 = vcmp.gt.f32.partialorder %v287_v29, 0.0  ;;  %v319_v35 = vmul.f32 0.2, %v287_v29  ;;  %vm311_vm5 = vcmp.gt.f32.partialorder %v295_v30, 0.0  ;;  %v327_v36 = vmul.f32 0.2, %v295_v30 }
 0x11e   :  { %v337_v37 = vsel %vm305_vm2, %v289_v23, %v321_v33  ;;  %v345_v38 = vsel %vm313_vm3, %v297_v24, %v329_v34  ;;  %v290_v39 = vadd.f32 %v627_v13, %v267_v25  ;;  %v298_v40 = vadd.f32 %v627_v13, %v275_v26 }
 0x11f   :  { %354 = vst.msk [vmem:[%s729_s4 + $0x10] sm:$0xff] %vm351_vm1, %v337_v37  ;;  %362 = vst.msk [vmem:[%s729_s4 + $0x50] sm:$0xff] %vm351_vm1, %v345_v38  ;;  %v335_v41 = vsel %vm303_vm4, %v287_v29, %v319_v35  ;;  %v343_v42 = vsel %vm311_vm5, %v295_v30, %v327_v36  ;;  %v288_v43 = vadd.f32 %v627_v13, %v265_v31  ;;  %v418_v45 = vpop.f32.mrb[4].mxu0  ;;  %v426_v46 = vpop.f32.mrb[4].mxu1 }
 0x120   :  { %v296_v44 = vadd.f32 %v627_v13, %v273_v32  ;;  %352 = vst.msk [vmem:[%s729_s4] sm:$0xff] %vm351_vm1, %v335_v41  ;;  %360 = vst.msk [vmem:[%s729_s4 + $0x40] sm:$0xff] %vm351_vm1, %v343_v42  ;;  %vm306_vm6 = vcmp.gt.f32.partialorder %v290_v39, 0.0  ;;  %v322_v47 = vmul.f32 0.2, %v290_v39  ;;  %vm314_vm7 = vcmp.gt.f32.partialorder %v298_v40, 0.0 }
 0x121   :  { %v330_v48 = vmul.f32 0.2, %v298_v40  ;;  %vm304_vm8 = vcmp.gt.f32.partialorder %v288_v43, 0.0  ;;  %v320_v49 = vmul.f32 0.2, %v288_v43  ;;  %v270_v53 = vmul.f32 %v418_v45, %v625_v11  ;;  %v210_v55 = vpop.f32.mrb[5].mxu0 }
 0x122   :  { %vm312_vm9 = vcmp.gt.f32.partialorder %v296_v44, 0.0  ;;  %v328_v50 = vmul.f32 0.2, %v296_v44  ;;  %v338_v51 = vsel %vm306_vm6, %v290_v39, %v322_v47  ;;  %v278_v54 = vmul.f32 %v426_v46, %v625_v11  ;;  %v242_v56 = vpop.f32.mrb[5].mxu1  ;;  %v419_v61 = vpop.f32.mrb[6].mxu0 }
 0x123   :  { %v346_v52 = vsel %vm314_vm7, %v298_v40, %v330_v48  ;;  %355 = vst.msk [vmem:[%s729_s4 + $0x18] sm:$0xff] %vm351_vm1, %v338_v51  ;;  %v336_v57 = vsel %vm304_vm8, %v288_v43, %v320_v49  ;;  %v268_v59 = vmul.f32 %v625_v11, %v210_v55  ;;  %v276_v60 = vmul.f32 %v625_v11, %v242_v56  ;;  %v427_v62 = vpop.f32.mrb[6].mxu1  ;;  %v213_v3 = vpop.f32.mrb[7].mxu0 }
 0x124   :  { %363 = vst.msk [vmem:[%s729_s4 + $0x58] sm:$0xff] %vm351_vm1, %v346_v52  ;;  %v344_v58 = vsel %vm312_vm9, %v296_v44, %v328_v50  ;;  %353 = vst.msk [vmem:[%s729_s4 + $0x8] sm:$0xff] %vm351_vm1, %v336_v57  ;;  %v293_v63 = vadd.f32 %v627_v13, %v270_v53  ;;  %v301_v0 = vadd.f32 %v627_v13, %v278_v54  ;;  %v245_v4 = vpop.f32.mrb[7].mxu1 }
 0x125   :  { %361 = vst.msk [vmem:[%s729_s4 + $0x48] sm:$0xff] %vm351_vm1, %v344_v58  ;;  %v271_v1 = vmul.f32 %v419_v61, %v625_v11  ;;  %v279_v2 = vmul.f32 %v427_v62, %v625_v11  ;;  %v291_v5 = vadd.f32 %v627_v13, %v268_v59  ;;  %v299_v6 = vadd.f32 %v627_v13, %v276_v60 }
 0x126   :  { %v269_v7 = vmul.f32 %v625_v11, %v213_v3  ;;  %v277_v8 = vmul.f32 %v625_v11, %v245_v4  ;;  %vm309_vm10 = vcmp.gt.f32.partialorder %v293_v63, 0.0  ;;  %v325_v9 = vmul.f32 0.2, %v293_v63 }
 0x127   :  { %vm317_vm11 = vcmp.gt.f32.partialorder %v301_v0, 0.0  ;;  %v333_v10 = vmul.f32 0.2, %v301_v0  ;;  %vm307_vm12 = vcmp.gt.f32.partialorder %v291_v5, 0.0  ;;  %v323_v12 = vmul.f32 0.2, %v291_v5 }
 0x128   :  { %vm315_vm13 = vcmp.gt.f32.partialorder %v299_v6, 0.0  ;;  %v331_v14 = vmul.f32 0.2, %v299_v6  ;;  %v341_v15 = vsel %vm309_vm10, %v293_v63, %v325_v9  ;;  %v294_v17 = vadd.f32 %v627_v13, %v271_v1 }
 0x129   :  { %v349_v16 = vsel %vm317_vm11, %v301_v0, %v333_v10  ;;  %v302_v18 = vadd.f32 %v627_v13, %v279_v2  ;;  %358 = vst.msk [vmem:[%s729_s4 + $0x30] sm:$0xff] %vm351_vm1, %v341_v15  ;;  %v339_v11 = vsel %vm307_vm12, %v291_v5, %v323_v12  ;;  %v292_v20 = vadd.f32 %v627_v13, %v269_v7 }
 0x12a   :  { %366 = vst.msk [vmem:[%s729_s4 + $0x70] sm:$0xff] %vm351_vm1, %v349_v16  ;;  %v347_v19 = vsel %vm315_vm13, %v299_v6, %v331_v14  ;;  %v300_v21 = vadd.f32 %v627_v13, %v277_v8  ;;  %356 = vst.msk [vmem:[%s729_s4 + $0x20] sm:$0xff] %vm351_vm1, %v339_v11  ;;  %vm310_vm14 = vcmp.gt.f32.partialorder %v294_v17, 0.0  ;;  %v326_v22 = vmul.f32 0.2, %v294_v17 }
 0x12b   :  { %364 = vst.msk [vmem:[%s729_s4 + $0x60] sm:$0xff] %vm351_vm1, %v347_v19  ;;  %vm318_vm15 = vcmp.gt.f32.partialorder %v302_v18, 0.0  ;;  %v334_v23 = vmul.f32 0.2, %v302_v18  ;;  %vm308_vm0 = vcmp.gt.f32.partialorder %v292_v20, 0.0 }
 0x12c   :  { %v324_v24 = vmul.f32 0.2, %v292_v20  ;;  %vm316_vm2 = vcmp.gt.f32.partialorder %v300_v21, 0.0  ;;  %v332_v25 = vmul.f32 0.2, %v300_v21  ;;  %v342_v26 = vsel %vm310_vm14, %v294_v17, %v326_v22 }
 0x12d   :  { %v350_v13 = vsel %vm318_vm15, %v302_v18, %v334_v23  ;;  %359 = vst.msk [vmem:[%s729_s4 + $0x38] sm:$0xff] %vm351_vm1, %v342_v26 }
 0x12e   :  { %367 = vst.msk [vmem:[%s729_s4 + $0x78] sm:$0xff] %vm351_vm1, %v350_v13  ;;  %v340_v27 = vsel %vm308_vm0, %v292_v20, %v324_v24  ;;  %v348_v28 = vsel %vm316_vm2, %v300_v21, %v332_v25 }
 0x12f   :  { %357 = vst.msk [vmem:[%s729_s4 + $0x28] sm:$0xff] %vm351_vm1, %v340_v27  ;;  %365 = vst.msk [vmem:[%s729_s4 + $0x68] sm:$0xff] %vm351_vm1, %v348_v28 }
 0x130   :  { %372 = vsyncpa [#allocation3], 1 }
 0x131   :  { %373 = vsyncpa [#allocation5], 1 }

// kernel: net_forward.4
= control target key start
LH: loop header
LB: loop body
LE: loop exit
PB: predicated region body
PF: predicated region fallthrough
CT: control target
= control target key end

     0   :  { %s1405_s1 = inlined_call_operand.vmem [shape: bf16[1024,128], index: 1, kind: input, shape index: {}]   ;;  %s1406_s0 = inlined_call_operand.vmem [shape: bf16[32,1024], index: 0, kind: input, shape index: {}]   ;;  %s1407_s2 = inlined_call_operand.vmem [shape: f32[1,128], index: 2, kind: input, shape index: {}]   ;;  %s1408_s3 = inlined_call_operand.vmem [shape: f32[1,128], index: 3, kind: input, shape index: {}]   ;;  %s1409_s4 = inlined_call_operand.vmem [shape: f32[32,128], index: 4, kind: output, shape index: {}]  }
   0x1   :  { %v1058_v0 = vld [vmem:[%s1405_s1 + $0x40] sm:$0xff]   ;;  %v1062_v4 = vld [vmem:[%s1405_s1 + $0x48] sm:$0xff]   ;;  %v1066_v8 = vld [vmem:[%s1405_s1 + $0x50] sm:$0xff]  }
   0x2   :  { %v1059_v1 = vld [vmem:[%s1405_s1 + $0xc0] sm:$0xff]   ;;  %946 = vmatprep.subr.bf16.mxu0 %v1058_v0  ;;  %v1063_v5 = vld [vmem:[%s1405_s1 + $0xc8] sm:$0xff]   ;;  %v1067_v9 = vld [vmem:[%s1405_s1 + $0xd0] sm:$0xff]  }
   0x3   :  { %v1060_v2 = vld [vmem:[%s1405_s1] sm:$0xff]   ;;  %974 = vmatprep.subr.bf16.mxu1 %v1059_v1  ;;  %v1064_v6 = vld [vmem:[%s1405_s1 + $0x8] sm:$0xff]   ;;  %v1068_v10 = vld [vmem:[%s1405_s1 + $0x10] sm:$0xff]  }
   0x4   :  { %v1061_v3 = vld [vmem:[%s1405_s1 + $0x80] sm:$0xff]   ;;  %947 = vmatpush3.bf16.msra.mxu0 %v1060_v2  ;;  %v1065_v7 = vld [vmem:[%s1405_s1 + $0x88] sm:$0xff]   ;;  %v1069_v11 = vld [vmem:[%s1405_s1 + $0x90] sm:$0xff]  }
   0x5   :  { %975 = vmatpush3.bf16.msra.mxu1 %v1061_v3  ;;  %948 = vmatprep.subr.bf16.mxu0 %v1062_v4  ;;  %v1070_v12 = vld [vmem:[%s1405_s1 + $0x58] sm:$0xff]   ;;  %v1074_v16 = vld [vmem:[%s1405_s1 + $0x60] sm:$0xff]   ;;  %v1078_v20 = vld [vmem:[%s1405_s1 + $0x68] sm:$0xff]  }
   0x6   :  { %976 = vmatprep.subr.bf16.mxu1 %v1063_v5  ;;  %v1071_v13 = vld [vmem:[%s1405_s1 + $0xd8] sm:$0xff]   ;;  %v1075_v17 = vld [vmem:[%s1405_s1 + $0xe0] sm:$0xff]   ;;  %v1079_v21 = vld [vmem:[%s1405_s1 + $0xe8] sm:$0xff]  }
   0x7   :  { %v1072_v14 = vld [vmem:[%s1405_s1 + $0x18] sm:$0xff]   ;;  %v1076_v18 = vld [vmem:[%s1405_s1 + $0x20] sm:$0xff]   ;;  %v1080_v22 = vld [vmem:[%s1405_s1 + $0x28] sm:$0xff]  }
   0x8   :  { %949 = vmatpush3.bf16.msra.mxu0 %v1064_v6  ;;  %v1073_v15 = vld [vmem:[%s1405_s1 + $0x98] sm:$0xff]   ;;  %v1077_v19 = vld [vmem:[%s1405_s1 + $0xa0] sm:$0xff]   ;;  %v1081_v23 = vld [vmem:[%s1405_s1 + $0xa8] sm:$0xff]  }
   0x9   :  { %977 = vmatpush3.bf16.msra.mxu1 %v1065_v7  ;;  %950 = vmatprep.subr.bf16.mxu0 %v1066_v8  ;;  %v1082_v24 = vld [vmem:[%s1405_s1 + $0x70] sm:$0xff]   ;;  %v1086_v28 = vld [vmem:[%s1405_s1 + $0x78] sm:$0xff]   ;;  %v18_v32 = vld [vmem:[%s1406_s0] sm:$0xff] }
   0xa   :  { %978 = vmatprep.subr.bf16.mxu1 %v1067_v9  ;;  %v1083_v25 = vld [vmem:[%s1405_s1 + $0xf0] sm:$0xff]   ;;  %v1087_v29 = vld [vmem:[%s1405_s1 + $0xf8] sm:$0xff]   ;;  %v22_v33 = vld [vmem:[%s1406_s0 + $0x20] sm:$0xff] }
   0xb   :  { %v1084_v26 = vld [vmem:[%s1405_s1 + $0x30] sm:$0xff]   ;;  %v1088_v30 = vld [vmem:[%s1405_s1 + $0x38] sm:$0xff]   ;;  %v19_v34 = vld [vmem:[%s1406_s0 + $0x8] sm:$0xff]  ;;  %v864_v35 = vcombine.low %v18_v32, %v22_v33  ;;  %v865_v36 = vcombine.high %v18_v32, %v22_v33 }
   0xc   :  { %951 = vmatpush3.bf16.msra.mxu0 %v1068_v10  ;;  %v1085_v27 = vld [vmem:[%s1405_s1 + $0xb0] sm:$0xff]   ;;  %v1089_v31 = vld [vmem:[%s1405_s1 + $0xb8] sm:$0xff]   ;;  %v23_v37 = vld [vmem:[%s1406_s0 + $0x28] sm:$0xff] }
   0xd   :  { %979 = vmatpush3.bf16.msra.mxu1 %v1069_v11  ;;  %952 = vmatprep.subr.bf16.mxu0 %v1070_v12  ;;  %v866_v38 = vcombine.low %v19_v34, %v23_v37  ;;  %v867_v39 = vcombine.high %v19_v34, %v23_v37  ;;  %v1090_v40 = vld [vmem:[%s1405_s1 + $0x140] sm:$0xff]   ;;  %v1094_v44 = vld [vmem:[%s1405_s1 + $0x148] sm:$0xff]   ;;  %v1098_v48 = vld [vmem:[%s1405_s1 + $0x150] sm:$0xff]  }
   0xe   :  { %980 = vmatprep.subr.bf16.mxu1 %v1071_v13  ;;  %658 = vmatprep.mubr.bf16.mxu0 %v865_v36  ;;  %v1091_v41 = vld [vmem:[%s1405_s1 + $0x1c0] sm:$0xff]   ;;  %v1095_v45 = vld [vmem:[%s1405_s1 + $0x1c8] sm:$0xff]   ;;  %v1099_v49 = vld [vmem:[%s1405_s1 + $0x1d0] sm:$0xff]  }
   0xf   :  { %707 = vmatprep.mubr.bf16.mxu1 %v867_v39  ;;  %v1092_v42 = vld [vmem:[%s1405_s1 + $0x100] sm:$0xff]   ;;  %v1096_v46 = vld [vmem:[%s1405_s1 + $0x108] sm:$0xff]   ;;  %v1100_v50 = vld [vmem:[%s1405_s1 + $0x110] sm:$0xff]  }
  0x10   :  { %953 = vmatpush3.bf16.msra.mxu0 %v1072_v14  ;;  %v1093_v43 = vld [vmem:[%s1405_s1 + $0x180] sm:$0xff]   ;;  %v1097_v47 = vld [vmem:[%s1405_s1 + $0x188] sm:$0xff]   ;;  %v1101_v51 = vld [vmem:[%s1405_s1 + $0x190] sm:$0xff]  }
  0x11   :  { %981 = vmatpush3.bf16.msra.mxu1 %v1073_v15  ;;  %954 = vmatprep.subr.bf16.mxu0 %v1074_v16  ;;  %v1102_v52 = vld [vmem:[%s1405_s1 + $0x158] sm:$0xff]   ;;  %v1106_v56 = vld [vmem:[%s1405_s1 + $0x160] sm:$0xff]   ;;  %v27_v63 = vld [vmem:[%s1406_s0 + $0x48] sm:$0xff] }
  0x12   :  { %982 = vmatprep.subr.bf16.mxu1 %v1075_v17  ;;  %v1103_v53 = vld [vmem:[%s1405_s1 + $0x1d8] sm:$0xff]   ;;  %v1107_v57 = vld [vmem:[%s1405_s1 + $0x1e0] sm:$0xff]   ;;  %v31_v0 = vld [vmem:[%s1406_s0 + $0x68] sm:$0xff] }
  0x13   :  { %v1104_v54 = vld [vmem:[%s1405_s1 + $0x118] sm:$0xff]   ;;  %v1108_v58 = vld [vmem:[%s1405_s1 + $0x120] sm:$0xff]   ;;  %v875_v2 = vcombine.high %v27_v63, %v31_v0  ;;  %v1110_v3 = vld [vmem:[%s1405_s1 + $0x168] sm:$0xff]   ;;  %v874_v4 = vcombine.low %v27_v63, %v31_v0 }
  0x14   :  { %955 = vmatpush3.bf16.msra.mxu0 %v1076_v18  ;;  %v1105_v55 = vld [vmem:[%s1405_s1 + $0x198] sm:$0xff]   ;;  %v1109_v59 = vld [vmem:[%s1405_s1 + $0x1a0] sm:$0xff]   ;;  %v1111_v5 = vld [vmem:[%s1405_s1 + $0x1e8] sm:$0xff]  }
  0x15   :  { %983 = vmatpush3.bf16.msra.mxu1 %v1077_v19  ;;  %956 = vmatprep.subr.bf16.mxu0 %v1078_v20  ;;  %v26_v60 = vld [vmem:[%s1406_s0 + $0x40] sm:$0xff]  ;;  %v1112_v6 = vld [vmem:[%s1405_s1 + $0x128] sm:$0xff]   ;;  %v1114_v8 = vld [vmem:[%s1405_s1 + $0x170] sm:$0xff]  }
  0x16   :  { %984 = vmatprep.subr.bf16.mxu1 %v1079_v21  ;;  %v30_v61 = vld [vmem:[%s1406_s0 + $0x60] sm:$0xff]  ;;  %v1113_v7 = vld [vmem:[%s1405_s1 + $0x1a8] sm:$0xff]   ;;  %v1115_v9 = vld [vmem:[%s1405_s1 + $0x1f0] sm:$0xff]  }
  0x17   :  { %v873_v62 = vcombine.high %v26_v60, %v30_v61  ;;  %v872_v1 = vcombine.low %v26_v60, %v30_v61  ;;  %v1116_v10 = vld [vmem:[%s1405_s1 + $0x130] sm:$0xff]   ;;  %v1118_v12 = vld [vmem:[%s1405_s1 + $0x178] sm:$0xff]  }
  0x18   :  { %957 = vmatpush3.bf16.msra.mxu0 %v1080_v22  ;;  %v1117_v11 = vld [vmem:[%s1405_s1 + $0x1b0] sm:$0xff]   ;;  %v1119_v13 = vld [vmem:[%s1405_s1 + $0x1f8] sm:$0xff]  }
  0x19   :  { %985 = vmatpush3.bf16.msra.mxu1 %v1081_v23  ;;  %958 = vmatprep.subr.bf16.mxu0 %v1082_v24  ;;  %v1120_v14 = vld [vmem:[%s1405_s1 + $0x138] sm:$0xff]   ;;  %v20_v16 = vld [vmem:[%s1406_s0 + $0x10] sm:$0xff] }
  0x1a   :  { %986 = vmatprep.subr.bf16.mxu1 %v1083_v25  ;;  %v1121_v15 = vld [vmem:[%s1405_s1 + $0x1b8] sm:$0xff]   ;;  %v24_v17 = vld [vmem:[%s1406_s0 + $0x30] sm:$0xff] }
  0x1b   :  { %v21_v18 = vld [vmem:[%s1406_s0 + $0x18] sm:$0xff]  ;;  %v868_v20 = vcombine.low %v20_v16, %v24_v17  ;;  %v869_v21 = vcombine.high %v20_v16, %v24_v17  ;;  %v28_v24 = vld [vmem:[%s1406_s0 + $0x50] sm:$0xff] }
  0x1c   :  { %959 = vmatpush3.bf16.msra.mxu0 %v1084_v26  ;;  %v25_v19 = vld [vmem:[%s1406_s0 + $0x38] sm:$0xff]  ;;  %v32_v25 = vld [vmem:[%s1406_s0 + $0x70] sm:$0xff] }
  0x1d   :  { %987 = vmatpush3.bf16.msra.mxu1 %v1085_v27  ;;  %960 = vmatprep.subr.bf16.mxu0 %v1086_v28  ;;  %v870_v22 = vcombine.low %v21_v18, %v25_v19  ;;  %v871_v23 = vcombine.high %v21_v18, %v25_v19  ;;  %v29_v26 = vld [vmem:[%s1406_s0 + $0x58] sm:$0xff]  ;;  %v877_v27 = vcombine.high %v28_v24, %v32_v25 }
  0x1e   :  { %988 = vmatprep.subr.bf16.mxu1 %v1087_v29  ;;  %v33_v28 = vld [vmem:[%s1406_s0 + $0x78] sm:$0xff] }
  0x1f   :  { %v879_v29 = vcombine.high %v29_v26, %v33_v28 }
  0x20   :  { %961 = vmatpush3.bf16.msra.mxu0 %v1088_v30  ;;  %v876_v30 = vcombine.low %v28_v24, %v32_v25 }
  0x21   :  { %989 = vmatpush3.bf16.msra.mxu1 %v1089_v31  ;;  %1002 = vmatprep.subr.bf16.mxu0 %v1090_v40  ;;  %v878_v31 = vcombine.low %v29_v26, %v33_v28 }
  0x22   :  { %1030 = vmatprep.subr.bf16.mxu1 %v1091_v41 }
  0x23   :  { %659 = vmatmul.mubr.bf16.vlgmr.msra.gmra.mrb[0].mxu0 %v864_v35 }
  0x24   :  { %708 = vmatmul.mubr.bf16.vlgmr.msra.gmra.mrb[0].mxu1 %v866_v38  ;;  %1003 = vmatpush3.bf16.msra.mxu0 %v1092_v42 }
  0x25   :  { %1031 = vmatpush3.bf16.msra.mxu1 %v1093_v43  ;;  %1004 = vmatprep.subr.bf16.mxu0 %v1094_v44 }
  0x26   :  { %1032 = vmatprep.subr.bf16.mxu1 %v1095_v45  ;;  %666 = vmatprep.mubr.bf16.mxu0 %v873_v62 }
  0x27   :  { %715 = vmatprep.mubr.bf16.mxu1 %v875_v2 }
  0x28   :  { %1005 = vmatpush3.bf16.msra.mxu0 %v1096_v46 }
  0x29   :  { %1033 = vmatpush3.bf16.msra.mxu1 %v1097_v47  ;;  %1006 = vmatprep.subr.bf16.mxu0 %v1098_v48 }
  0x2a   :  { %1034 = vmatprep.subr.bf16.mxu1 %v1099_v49 }
  0x2b   :  { %667 = vmatmul.mubr.bf16.gmra.mrb[4].mxu0 %v872_v1 }
  0x2c   :  { %1007 = vmatpush3.bf16.msra.mxu0 %v1100_v50  ;;  %716 = vmatmul.mubr.bf16.gmra.mrb[4].mxu1 %v874_v4 }
  0x2d   :  { %1035 = vmatpush3.bf16.msra.mxu1 %v1101_v51  ;;  %1008 = vmatprep.subr.bf16.mxu0 %v1102_v52 }
  0x2e   :  { %1036 = vmatprep.subr.bf16.mxu1 %v1103_v53  ;;  %756 = vmatprep.mubr.bf16.mxu0 %v869_v21 }
  0x2f   :  { %805 = vmatprep.mubr.bf16.mxu1 %v871_v23 }
  0x30   :  { %1009 = vmatpush3.bf16.msra.mxu0 %v1104_v54 }
  0x31   :  { %1037 = vmatpush3.bf16.msra.mxu1 %v1105_v55  ;;  %1010 = vmatprep.subr.bf16.mxu0 %v1106_v56 }
  0x32   :  { %1038 = vmatprep.subr.bf16.mxu1 %v1107_v57 }
  0x34   :  { %1011 = vmatpush3.bf16.msra.mxu0 %v1108_v58 }
  0x35   :  { %1039 = vmatpush3.bf16.msra.mxu1 %v1109_v59  ;;  %1012 = vmatprep.subr.bf16.mxu0 %v1110_v3 }
  0x36   :  { %1040 = vmatprep.subr.bf16.mxu1 %v1111_v5 }
  0x38   :  { %1013 = vmatpush3.bf16.msra.mxu0 %v1112_v6 }
  0x39   :  { %1041 = vmatpush3.bf16.msra.mxu1 %v1113_v7  ;;  %1014 = vmatprep.subr.bf16.mxu0 %v1114_v8 }
  0x3a   :  { %1042 = vmatprep.subr.bf16.mxu1 %v1115_v9  ;;  %v944_v9 = vld [vmem:[%s1407_s2] ss:$0 sm:$0xff] }
  0x3c   :  { %1015 = vmatpush3.bf16.msra.mxu0 %v1116_v10 }
  0x3d   :  { %1043 = vmatpush3.bf16.msra.mxu1 %v1117_v11  ;;  %1016 = vmatprep.subr.bf16.mxu0 %v1118_v12  ;;  %v945_v12 = vld [vmem:[%s1408_s3] ss:$0 sm:$0xff] }
  0x3e   :  { %1044 = vmatprep.subr.bf16.mxu1 %v1119_v13 }
  0x40   :  { %1017 = vmatpush3.bf16.msra.mxu0 %v1120_v14 }
  0x41   :  { %1045 = vmatpush3.bf16.msra.mxu1 %v1121_v15 }
  0x43   :  { %757 = vmatmul.mubr.bf16.vlgmr.msra.gmra.mrb[8].mxu0 %v868_v20 }
  0x44   :  { %806 = vmatmul.mubr.bf16.vlgmr.msra.gmra.mrb[8].mxu1 %v870_v22  ;;  %764 = vmatprep.mubr.bf16.mxu0 %v877_v27 }
  0x45   :  { %813 = vmatprep.mubr.bf16.mxu1 %v879_v29 }
  0x4b   :  { %765 = vmatmul.mubr.bf16.gmra.mrb[12].mxu0 %v876_v30 }
  0x4c   :  { %814 = vmatmul.mubr.bf16.gmra.mrb[12].mxu1 %v878_v31 }
  0xf6   :  { %v962_v32 = vpop.f32.mrb[0].mxu0 }
  0xf7   :  { %v990_v33 = vpop.f32.mrb[0].mxu1  ;;  %v963_v34 = vpop.f32.mrb[1].mxu0 }
  0xf8   :  { %v964_v35 = vadd.f32 %v963_v34, %v962_v32  ;;  %v991_v36 = vpop.f32.mrb[1].mxu1  ;;  %v965_v37 = vpop.f32.mrb[2].mxu0 }
  0xf9   :  { %v992_v38 = vadd.f32 %v991_v36, %v990_v33  ;;  %v993_v39 = vpop.f32.mrb[2].mxu1  ;;  %v966_v40 = vpop.f32.mrb[3].mxu0 }
  0xfa   :  { %v967_v41 = vadd.f32 %v966_v40, %v965_v37  ;;  %v994_v42 = vpop.f32.mrb[3].mxu1 }
  0xfb   :  { %v710_v43 = vadd.f32 %v992_v38, %v964_v35  ;;  %v995_v44 = vadd.f32 %v994_v42, %v993_v39 }
  0xfd   :  { %v713_v45 = vadd.f32 %v995_v44, %v967_v41 }
  0xfe   :  { %v968_v46 = vpop.f32.mrb[4].mxu0 }
  0xff   :  { %v996_v47 = vpop.f32.mrb[4].mxu1  ;;  %v969_v48 = vpop.f32.mrb[5].mxu0 }
 0x100   :  { %v970_v49 = vadd.f32 %v969_v48, %v968_v46  ;;  %v997_v50 = vpop.f32.mrb[5].mxu1  ;;  %v971_v51 = vpop.f32.mrb[6].mxu0 }
 0x101   :  { %v998_v52 = vadd.f32 %v997_v50, %v996_v47  ;;  %v999_v53 = vpop.f32.mrb[6].mxu1  ;;  %v972_v54 = vpop.f32.mrb[7].mxu0 }
 0x102   :  { %v973_v55 = vadd.f32 %v972_v54, %v971_v51  ;;  %v1000_v56 = vpop.f32.mrb[7].mxu1 }
 0x103   :  { %v718_v57 = vadd.f32 %v998_v52, %v970_v49  ;;  %v1001_v58 = vadd.f32 %v1000_v56, %v999_v53 }
 0x105   :  { %v721_v59 = vadd.f32 %v1001_v58, %v973_v55 }
 0x116   :  { %v1018_v60 = vpop.f32.mrb[8].mxu0 }
 0x117   :  { %v1046_v61 = vpop.f32.mrb[8].mxu1  ;;  %v1019_v62 = vpop.f32.mrb[9].mxu0 }
 0x118   :  { %v1047_v63 = vpop.f32.mrb[9].mxu1  ;;  %v1020_v0 = vadd.f32 %v1019_v62, %v1018_v60  ;;  %v1021_v2 = vpop.f32.mrb[10].mxu0 }
 0x119   :  { %v1048_v1 = vadd.f32 %v1047_v63, %v1046_v61  ;;  %v1049_v3 = vpop.f32.mrb[10].mxu1  ;;  %v1022_v4 = vpop.f32.mrb[11].mxu0 }
 0x11a   :  { %v1050_v5 = vpop.f32.mrb[11].mxu1  ;;  %v759_v6 = vadd.f32 %v1020_v0, %v710_v43  ;;  %v1023_v7 = vadd.f32 %v1022_v4, %v1021_v2 }
 0x11b   :  { %v1051_v8 = vadd.f32 %v1050_v5, %v1049_v3 }
 0x11c   :  { %v808_v10 = vadd.f32 %v1048_v1, %v759_v6  ;;  %v762_v11 = vadd.f32 %v1023_v7, %v713_v45 }
 0x11e   :  { %v829_v13 = vmul.f32 %v944_v9, %v808_v10  ;;  %v811_v14 = vadd.f32 %v1051_v8, %v762_v11  ;;  %v1024_v15 = vpop.f32.mrb[12].mxu0 }
 0x11f   :  { %v1052_v16 = vpop.f32.mrb[12].mxu1  ;;  %v1025_v17 = vpop.f32.mrb[13].mxu0 }
 0x120   :  { %v1053_v18 = vpop.f32.mrb[13].mxu1  ;;  %v840_v19 = vadd.f32 %v945_v12, %v829_v13  ;;  %v830_v20 = vmul.f32 %v944_v9, %v811_v14  ;;  %v1026_v21 = vadd.f32 %v1025_v17, %v1024_v15  ;;  %v1027_v23 = vpop.f32.mrb[14].mxu0 }
 0x121   :  { %v1054_v22 = vadd.f32 %v1053_v18, %v1052_v16  ;;  %v1055_v24 = vpop.f32.mrb[14].mxu1  ;;  %v1028_v25 = vpop.f32.mrb[15].mxu0 }
 0x122   :  { %v1056_v26 = vpop.f32.mrb[15].mxu1  ;;  %vm844_vm0 = vcmp.gt.f32.partialorder %v840_v19, 0.0  ;;  %v848_v27 = vmul.f32 0.2, %v840_v19  ;;  %v841_v28 = vadd.f32 %v945_v12, %v830_v20  ;;  %v767_v29 = vadd.f32 %v1026_v21, %v718_v57 }
 0x123   :  { %v1029_v30 = vadd.f32 %v1028_v25, %v1027_v23  ;;  %v1057_v31 = vadd.f32 %v1056_v26, %v1055_v24 }
 0x124   :  { %v852_v32 = vsel %vm844_vm0, %v840_v19, %v848_v27  ;;  %vm845_vm1 = vcmp.gt.f32.partialorder %v841_v28, 0.0  ;;  %v849_v33 = vmul.f32 0.2, %v841_v28  ;;  %v816_v34 = vadd.f32 %v1054_v22, %v767_v29 }
 0x125   :  { %856 = vst [vmem:[%s1409_s4] sm:$0xff] %v852_v32  ;;  %v770_v35 = vadd.f32 %v1029_v30, %v721_v59 }
 0x126   :  { %v853_v36 = vsel %vm845_vm1, %v841_v28, %v849_v33  ;;  %v831_v37 = vmul.f32 %v944_v9, %v816_v34 }
 0x127   :  { %857 = vst [vmem:[%s1409_s4 + $0x8] sm:$0xff] %v853_v36  ;;  %v819_v38 = vadd.f32 %v1057_v31, %v770_v35 }
 0x128   :  { %v842_v39 = vadd.f32 %v945_v12, %v831_v37 }
 0x129   :  { %v832_v40 = vmul.f32 %v944_v9, %v819_v38 }
 0x12a   :  { %vm846_vm2 = vcmp.gt.f32.partialorder %v842_v39, 0.0  ;;  %v850_v41 = vmul.f32 0.2, %v842_v39 }
 0x12b   :  { %v843_v42 = vadd.f32 %v945_v12, %v832_v40 }
 0x12c   :  { %v854_v43 = vsel %vm846_vm2, %v842_v39, %v850_v41 }
 0x12d   :  { %858 = vst [vmem:[%s1409_s4 + $0x10] sm:$0xff] %v854_v43  ;;  %vm847_vm3 = vcmp.gt.f32.partialorder %v843_v42, 0.0  ;;  %v851_v44 = vmul.f32 0.2, %v843_v42 }
 0x12f   :  { %v855_v45 = vsel %vm847_vm3, %v843_v42, %v851_v44 }
 0x130   :  { %859 = vst [vmem:[%s1409_s4 + $0x18] sm:$0xff] %v855_v45 }

// kernel: net_forward.5
= control target key start
LH: loop header
LB: loop body
LE: loop exit
PB: predicated region body
PF: predicated region fallthrough
CT: control target
= control target key end

     0   :  { %v307_v28 = vlaneseq  ;;  %v2340_v36 = vmov 1966171168   ;;  %s2897_s0 = inlined_call_operand.vmem [shape: bf16[2,2048], index: 0, kind: input, shape index: {}]   ;;  %s2898_s1 = inlined_call_operand.vmem [shape: bf16[2048,32], index: 1, kind: input, shape index: {}]   ;;  %s2899_s2 = inlined_call_operand.vmem [shape: f32[1,32], index: 2, kind: input, shape index: {}]   ;;  %s2900_s3 = inlined_call_operand.vmem [shape: f32[1,32], index: 3, kind: input, shape index: {}]   ;;  %s2901_s4 = inlined_call_operand.vmem [shape: bf16[32,32], index: 4, kind: input, shape index: {}]   ;;  %s2902_s5 = inlined_call_operand.vmem [shape: f32[1,32], index: 5, kind: input, shape index: {}]   ;;  %s2903_s6 = inlined_call_operand.vmem [shape: bf16[32,32], index: 6, kind: input, shape index: {}]   ;;  %s2904_s7 = inlined_call_operand.vmem [shape: f32[1,32], index: 7, kind: input, shape index: {}]   ;;  %s2905_s8 = inlined_call_operand.vmem [shape: bf16[32,32], index: 8, kind: input, shape index: {}]   ;;  %s2906_s9 = inlined_call_operand.vmem [shape: f32[1,32], index: 9, kind: input, shape index: {}]   ;;  %s2907_s10 = inlined_call_operand.vmem [shape: bf16[32,128], index: 10, kind: input, shape index: {}]   ;;  %s2908_s11 = inlined_call_operand.vmem [shape: f32[1,128], index: 11, kind: input, shape index: {}]   ;;  %s2909_s12 = inlined_call_operand.hbm [shape: f32[2,128], index: 12, kind: output, shape index: {}]  }
   0x1   :  { %v2178_v0 = vld [vmem:[%s2898_s1 + $0x40] sm:$0xff]   ;;  %v2182_v4 = vld [vmem:[%s2898_s1 + $0x48] sm:$0xff]   ;;  %v2186_v8 = vld [vmem:[%s2898_s1 + $0x50] sm:$0xff]   ;;  %v305_v37 = vunpack.c.l.s4 %v2340_v36 }
   0x2   :  { %v2179_v1 = vld [vmem:[%s2898_s1 + $0xc0] sm:$0xff]   ;;  %1954 = vmatprep.subr.bf16.mxu0 %v2178_v0  ;;  %v2183_v5 = vld [vmem:[%s2898_s1 + $0xc8] sm:$0xff]   ;;  %v2187_v9 = vld [vmem:[%s2898_s1 + $0xd0] sm:$0xff]   ;;  %v308_v33 = vshrl.u32 %v307_v28, 7 }
   0x3   :  { %v2180_v2 = vld [vmem:[%s2898_s1] sm:$0xff]   ;;  %1976 = vmatprep.subr.bf16.mxu1 %v2179_v1  ;;  %v2184_v6 = vld [vmem:[%s2898_s1 + $0x8] sm:$0xff]   ;;  %v2188_v10 = vld [vmem:[%s2898_s1 + $0x10] sm:$0xff]   ;;  %v306_v40 = vunpack.c.0.s8 %v305_v37 }
   0x4   :  { %v2181_v3 = vld [vmem:[%s2898_s1 + $0x80] sm:$0xff]   ;;  %1955 = vmatpush3.bf16.msra.mxu0 %v2180_v2  ;;  %v2185_v7 = vld [vmem:[%s2898_s1 + $0x88] sm:$0xff]   ;;  %v2189_v11 = vld [vmem:[%s2898_s1 + $0x90] sm:$0xff]  }
   0x5   :  { %1977 = vmatpush3.bf16.msra.mxu1 %v2181_v3  ;;  %1956 = vmatprep.subr.bf16.mxu0 %v2182_v4  ;;  %v2190_v12 = vld [vmem:[%s2898_s1 + $0x58] sm:$0xff]   ;;  %v2194_v16 = vld [vmem:[%s2898_s1 + $0x60] sm:$0xff]   ;;  %v2198_v20 = vld [vmem:[%s2898_s1 + $0x68] sm:$0xff]   ;;  %v2514_v41 = vsub.s32 %v306_v40, %v308_v33 }
   0x6   :  { %1978 = vmatprep.subr.bf16.mxu1 %v2183_v5  ;;  %v2191_v13 = vld [vmem:[%s2898_s1 + $0xd8] sm:$0xff]   ;;  %v2195_v17 = vld [vmem:[%s2898_s1 + $0xe0] sm:$0xff]   ;;  %v2199_v21 = vld [vmem:[%s2898_s1 + $0xe8] sm:$0xff]  }
   0x7   :  { %v2192_v14 = vld [vmem:[%s2898_s1 + $0x18] sm:$0xff]   ;;  %v2196_v18 = vld [vmem:[%s2898_s1 + $0x20] sm:$0xff]   ;;  %v2200_v22 = vld [vmem:[%s2898_s1 + $0x28] sm:$0xff]  }
   0x8   :  { %1957 = vmatpush3.bf16.msra.mxu0 %v2184_v6  ;;  %v2193_v15 = vld [vmem:[%s2898_s1 + $0x98] sm:$0xff]   ;;  %v2197_v19 = vld [vmem:[%s2898_s1 + $0xa0] sm:$0xff]   ;;  %v2201_v23 = vld [vmem:[%s2898_s1 + $0xa8] sm:$0xff]  }
   0x9   :  { %1979 = vmatpush3.bf16.msra.mxu1 %v2185_v7  ;;  %1958 = vmatprep.subr.bf16.mxu0 %v2186_v8  ;;  %v2202_v24 = vld [vmem:[%s2898_s1 + $0x70] sm:$0xff]   ;;  %v2206_v29 = vld [vmem:[%s2898_s1 + $0x78] sm:$0xff]   ;;  %v43_v34 = vld [vmem:[%s2897_s0] sm:$0xff] }
   0xa   :  { %1980 = vmatprep.subr.bf16.mxu1 %v2187_v9  ;;  %v2203_v25 = vld [vmem:[%s2898_s1 + $0xf0] sm:$0xff]   ;;  %v2207_v30 = vld [vmem:[%s2898_s1 + $0xf8] sm:$0xff]   ;;  %v2211_v35 = vld [vmem:[%s2898_s1 + $0x140] sm:$0xff]   ;;  %v303_v39 = vcombine.high %v43_v34, %v43_v34  ;;  %v310_v42 = vrot.slane %v43_v34, %v2514_v41 }
   0xb   :  { %v2204_v26 = vld [vmem:[%s2898_s1 + $0x30] sm:$0xff]   ;;  %v2208_v31 = vld [vmem:[%s2898_s1 + $0x38] sm:$0xff]   ;;  %v2212_v38 = vld [vmem:[%s2898_s1 + $0x1c0] sm:$0xff]  }
   0xc   :  { %1959 = vmatpush3.bf16.msra.mxu0 %v2188_v10  ;;  %v2205_v27 = vld [vmem:[%s2898_s1 + $0xb0] sm:$0xff]   ;;  %v2209_v32 = vld [vmem:[%s2898_s1 + $0xb8] sm:$0xff]   ;;  %v2518_v43 = vrot.slane %v303_v39, %v2514_v41  ;;  %v318_v44 = vcombine.high %v310_v42, %v310_v42  ;;  %v326_v45 = vrot.slane %v310_v42, %v2514_v41  ;;  %v2213_v47 = vld [vmem:[%s2898_s1 + $0x100] sm:$0xff]  }
   0xd   :  { %1981 = vmatpush3.bf16.msra.mxu1 %v2189_v11  ;;  %1960 = vmatprep.subr.bf16.mxu0 %v2190_v12  ;;  %v2214_v49 = vld [vmem:[%s2898_s1 + $0x180] sm:$0xff]   ;;  %v2215_v52 = vld [vmem:[%s2898_s1 + $0x148] sm:$0xff]   ;;  %v2219_v58 = vld [vmem:[%s2898_s1 + $0x150] sm:$0xff]  }
   0xe   :  { %1982 = vmatprep.subr.bf16.mxu1 %v2191_v13  ;;  %v319_v46 = vcombine.high %v2518_v43, %v2518_v43  ;;  %v340_v48 = vrot.slane %v318_v44, %v2514_v41  ;;  %v348_v51 = vcombine.high %v326_v45, %v326_v45  ;;  %v2216_v54 = vld [vmem:[%s2898_s1 + $0x1c8] sm:$0xff]   ;;  %v2220_v59 = vld [vmem:[%s2898_s1 + $0x1d0] sm:$0xff]   ;;  %v2223_v62 = vld [vmem:[%s2898_s1 + $0x158] sm:$0xff]  }
   0xf   :  { %v2217_v55 = vld [vmem:[%s2898_s1 + $0x108] sm:$0xff]   ;;  %v2221_v60 = vld [vmem:[%s2898_s1 + $0x110] sm:$0xff]   ;;  %v2224_v63 = vld [vmem:[%s2898_s1 + $0x1d8] sm:$0xff]  }
  0x10   :  { %1961 = vmatpush3.bf16.msra.mxu0 %v2192_v14  ;;  %v347_v50 = vrot.slane %v319_v46, %v2514_v41  ;;  %1217 = vmatprep.mubr.bf16.mxu0 %v340_v48  ;;  %v350_v53 = vcombine.high %v340_v48, %v340_v48  ;;  %v2218_v57 = vld [vmem:[%s2898_s1 + $0x188] sm:$0xff]   ;;  %v2222_v61 = vld [vmem:[%s2898_s1 + $0x190] sm:$0xff]   ;;  %v2225_v0 = vld [vmem:[%s2898_s1 + $0x118] sm:$0xff]  }
  0x11   :  { %1983 = vmatpush3.bf16.msra.mxu1 %v2193_v15  ;;  %1962 = vmatprep.subr.bf16.mxu0 %v2194_v16  ;;  %v2226_v1 = vld [vmem:[%s2898_s1 + $0x198] sm:$0xff]   ;;  %v2227_v2 = vld [vmem:[%s2898_s1 + $0x160] sm:$0xff]   ;;  %v2231_v6 = vld [vmem:[%s2898_s1 + $0x168] sm:$0xff]  }
  0x12   :  { %1984 = vmatprep.subr.bf16.mxu1 %v2195_v17  ;;  %v351_v56 = vcombine.high %v347_v50, %v347_v50  ;;  %1257 = vmatprep.mubr.bf16.mxu1 %v350_v53  ;;  %v2228_v3 = vld [vmem:[%s2898_s1 + $0x1e0] sm:$0xff]   ;;  %v2232_v7 = vld [vmem:[%s2898_s1 + $0x1e8] sm:$0xff]   ;;  %v2235_v10 = vld [vmem:[%s2898_s1 + $0x170] sm:$0xff]  }
  0x13   :  { %v2229_v4 = vld [vmem:[%s2898_s1 + $0x120] sm:$0xff]   ;;  %v2233_v8 = vld [vmem:[%s2898_s1 + $0x128] sm:$0xff]   ;;  %v2236_v11 = vld [vmem:[%s2898_s1 + $0x1f0] sm:$0xff]  }
  0x14   :  { %1963 = vmatpush3.bf16.msra.mxu0 %v2196_v18  ;;  %v2230_v5 = vld [vmem:[%s2898_s1 + $0x1a0] sm:$0xff]   ;;  %v2234_v9 = vld [vmem:[%s2898_s1 + $0x1a8] sm:$0xff]   ;;  %v2237_v12 = vld [vmem:[%s2898_s1 + $0x130] sm:$0xff]   ;;  %v333_v18 = vrot.slane %v2518_v43, %v2514_v41 }
  0x15   :  { %1985 = vmatpush3.bf16.msra.mxu1 %v2197_v19  ;;  %1964 = vmatprep.subr.bf16.mxu0 %v2198_v20  ;;  %v2238_v13 = vld [vmem:[%s2898_s1 + $0x1b0] sm:$0xff]   ;;  %v2239_v14 = vld [vmem:[%s2898_s1 + $0x178] sm:$0xff]   ;;  %v2243_v19 = vld [vmem:[%s2898_s1 + $0x240] sm:$0xff]  }
  0x16   :  { %1986 = vmatprep.subr.bf16.mxu1 %v2199_v21  ;;  %v2240_v15 = vld [vmem:[%s2898_s1 + $0x1f8] sm:$0xff]   ;;  %v2244_v20 = vld [vmem:[%s2898_s1 + $0x2c0] sm:$0xff]   ;;  %v2251_v28 = vld [vmem:[%s2898_s1 + $0x250] sm:$0xff]  }
  0x17   :  { %v2241_v16 = vld [vmem:[%s2898_s1 + $0x138] sm:$0xff]   ;;  %v2245_v21 = vld [vmem:[%s2898_s1 + $0x200] sm:$0xff]   ;;  %v2263_v40 = vld [vmem:[%s2898_s1 + $0x268] sm:$0xff]  }
  0x18   :  { %1965 = vmatpush3.bf16.msra.mxu0 %v2200_v22  ;;  %v2242_v17 = vld [vmem:[%s2898_s1 + $0x1b8] sm:$0xff]   ;;  %v2246_v22 = vld [vmem:[%s2898_s1 + $0x280] sm:$0xff]   ;;  %v2264_v42 = vld [vmem:[%s2898_s1 + $0x2e8] sm:$0xff]  }
  0x19   :  { %1987 = vmatpush3.bf16.msra.mxu1 %v2201_v23  ;;  %1966 = vmatprep.subr.bf16.mxu0 %v2202_v24  ;;  %v349_v23 = vcombine.high %v333_v18, %v333_v18  ;;  %v2247_v24 = vld [vmem:[%s2898_s1 + $0x248] sm:$0xff]   ;;  %v2256_v33 = vld [vmem:[%s2898_s1 + $0x2d8] sm:$0xff]   ;;  %v2259_v36 = vld [vmem:[%s2898_s1 + $0x260] sm:$0xff]  }
  0x1a   :  { %1988 = vmatprep.subr.bf16.mxu1 %v2203_v25  ;;  %v2248_v25 = vld [vmem:[%s2898_s1 + $0x2c8] sm:$0xff]   ;;  %v2257_v34 = vld [vmem:[%s2898_s1 + $0x218] sm:$0xff]   ;;  %v2260_v37 = vld [vmem:[%s2898_s1 + $0x2e0] sm:$0xff]  }
  0x1b   :  { %v2262_v39 = vld [vmem:[%s2898_s1 + $0x2a0] sm:$0xff]   ;;  %v2265_v43 = vld [vmem:[%s2898_s1 + $0x228] sm:$0xff]  }
  0x1c   :  { %1967 = vmatpush3.bf16.msra.mxu0 %v2204_v26  ;;  %v2249_v26 = vld [vmem:[%s2898_s1 + $0x208] sm:$0xff]  }
  0x1d   :  { %1989 = vmatpush3.bf16.msra.mxu1 %v2205_v27  ;;  %1968 = vmatprep.subr.bf16.mxu0 %v2206_v29  ;;  %v2250_v27 = vld [vmem:[%s2898_s1 + $0x288] sm:$0xff]   ;;  %v2252_v29 = vld [vmem:[%s2898_s1 + $0x2d0] sm:$0xff]  }
  0x1e   :  { %1990 = vmatprep.subr.bf16.mxu1 %v2207_v30  ;;  %v2253_v30 = vld [vmem:[%s2898_s1 + $0x210] sm:$0xff]   ;;  %v2266_v44 = vld [vmem:[%s2898_s1 + $0x2a8] sm:$0xff]  }
  0x1f   :  { %v44_v46 = vld [vmem:[%s2897_s0 + $0x8] sm:$0xff] }
  0x20   :  { %1969 = vmatpush3.bf16.msra.mxu0 %v2208_v31  ;;  %v2254_v31 = vld [vmem:[%s2898_s1 + $0x290] sm:$0xff]   ;;  %v359_v48 = vrot.slane %v44_v46, %v2514_v41 }
  0x21   :  { %1991 = vmatpush3.bf16.msra.mxu1 %v2209_v32  ;;  %1998 = vmatprep.subr.bf16.mxu0 %v2211_v35  ;;  %v2255_v32 = vld [vmem:[%s2898_s1 + $0x258] sm:$0xff]  }
  0x22   :  { %2020 = vmatprep.subr.bf16.mxu1 %v2212_v38  ;;  %v2258_v35 = vld [vmem:[%s2898_s1 + $0x298] sm:$0xff]   ;;  %v2261_v38 = vld [vmem:[%s2898_s1 + $0x220] sm:$0xff]  }
  0x23   :  { %1218 = vmatmul.mubr.bf16.vlgmr.msra.gmra.mrb[0].mxu0 %v326_v45  ;;  %v2267_v45 = vld [vmem:[%s2898_s1 + $0x270] sm:$0xff]  }
  0x24   :  { %1999 = vmatpush3.bf16.msra.mxu0 %v2213_v47  ;;  %1258 = vmatmul.mubr.bf16.vlgmr.msra.gmra.mrb[0].mxu1 %v348_v51  ;;  %v2268_v47 = vld [vmem:[%s2898_s1 + $0x2f0] sm:$0xff]  }
  0x25   :  { %2000 = vmatprep.subr.bf16.mxu0 %v2215_v52  ;;  %2021 = vmatpush3.bf16.msra.mxu1 %v2214_v49  ;;  %v352_v49 = vcombine.high %v44_v46, %v44_v46  ;;  %v2270_v51 = vld [vmem:[%s2898_s1 + $0x2b0] sm:$0xff]   ;;  %v367_v52 = vcombine.high %v359_v48, %v359_v48 }
  0x26   :  { %1297 = vmatprep.mubr.bf16.mxu0 %v347_v50  ;;  %2022 = vmatprep.subr.bf16.mxu1 %v2216_v54  ;;  %v2269_v50 = vld [vmem:[%s2898_s1 + $0x230] sm:$0xff]   ;;  %v2271_v54 = vld [vmem:[%s2898_s1 + $0x278] sm:$0xff]  }
  0x27   :  { %1337 = vmatprep.mubr.bf16.mxu1 %v351_v56  ;;  %v2706_v53 = vrot.slane %v352_v49, %v2514_v41  ;;  %v389_v56 = vrot.slane %v367_v52, %v2514_v41 }
  0x28   :  { %2001 = vmatpush3.bf16.msra.mxu0 %v2217_v55  ;;  %v2272_v55 = vld [vmem:[%s2898_s1 + $0x2f8] sm:$0xff]  }
  0x29   :  { %2002 = vmatprep.subr.bf16.mxu0 %v2219_v58  ;;  %2023 = vmatpush3.bf16.msra.mxu1 %v2218_v57  ;;  %v368_v57 = vcombine.high %v2706_v53, %v2706_v53  ;;  %v2273_v58 = vld [vmem:[%s2898_s1 + $0x238] sm:$0xff]  }
  0x2a   :  { %2024 = vmatprep.subr.bf16.mxu1 %v2220_v59  ;;  %v2274_v59 = vld [vmem:[%s2898_s1 + $0x2b8] sm:$0xff]  }
  0x2c   :  { %2003 = vmatpush3.bf16.msra.mxu0 %v2221_v60  ;;  %v399_v60 = vcombine.high %v389_v56, %v389_v56 }
  0x2d   :  { %2004 = vmatprep.subr.bf16.mxu0 %v2223_v62  ;;  %2025 = vmatpush3.bf16.msra.mxu1 %v2222_v61  ;;  %v375_v61 = vrot.slane %v359_v48, %v2514_v41  ;;  %v2275_v62 = vld [vmem:[%s2898_s1 + $0x340] sm:$0xff]  }
  0x2e   :  { %2026 = vmatprep.subr.bf16.mxu1 %v2224_v63  ;;  %v2276_v63 = vld [vmem:[%s2898_s1 + $0x3c0] sm:$0xff]  }
  0x30   :  { %2005 = vmatpush3.bf16.msra.mxu0 %v2225_v0  ;;  %v396_v0 = vrot.slane %v368_v57, %v2514_v41 }
  0x31   :  { %2006 = vmatprep.subr.bf16.mxu0 %v2227_v2  ;;  %2027 = vmatpush3.bf16.msra.mxu1 %v2226_v1  ;;  %v2277_v1 = vld [vmem:[%s2898_s1 + $0x300] sm:$0xff]  }
  0x32   :  { %2028 = vmatprep.subr.bf16.mxu1 %v2228_v3  ;;  %v2278_v2 = vld [vmem:[%s2898_s1 + $0x380] sm:$0xff]   ;;  %v397_v3 = vcombine.high %v375_v61, %v375_v61 }
  0x34   :  { %2007 = vmatpush3.bf16.msra.mxu0 %v2229_v4  ;;  %v2279_v4 = vld [vmem:[%s2898_s1 + $0x348] sm:$0xff]  }
  0x35   :  { %2008 = vmatprep.subr.bf16.mxu0 %v2231_v6  ;;  %2029 = vmatpush3.bf16.msra.mxu1 %v2230_v5  ;;  %v2280_v5 = vld [vmem:[%s2898_s1 + $0x3c8] sm:$0xff]   ;;  %v400_v6 = vcombine.high %v396_v0, %v396_v0 }
  0x36   :  { %2030 = vmatprep.subr.bf16.mxu1 %v2232_v7  ;;  %v2281_v7 = vld [vmem:[%s2898_s1 + $0x308] sm:$0xff]  }
  0x38   :  { %2009 = vmatpush3.bf16.msra.mxu0 %v2233_v8  ;;  %v2282_v8 = vld [vmem:[%s2898_s1 + $0x388] sm:$0xff]  }
  0x39   :  { %2010 = vmatprep.subr.bf16.mxu0 %v2235_v10  ;;  %2031 = vmatpush3.bf16.msra.mxu1 %v2234_v9  ;;  %v2283_v9 = vld [vmem:[%s2898_s1 + $0x350] sm:$0xff]  }
  0x3a   :  { %2032 = vmatprep.subr.bf16.mxu1 %v2236_v11  ;;  %v2284_v10 = vld [vmem:[%s2898_s1 + $0x3d0] sm:$0xff]  }
  0x3b   :  { %v2285_v11 = vld [vmem:[%s2898_s1 + $0x310] sm:$0xff]  }
  0x3c   :  { %2011 = vmatpush3.bf16.msra.mxu0 %v2237_v12  ;;  %v2286_v12 = vld [vmem:[%s2898_s1 + $0x390] sm:$0xff]  }
  0x3d   :  { %2012 = vmatprep.subr.bf16.mxu0 %v2239_v14  ;;  %2033 = vmatpush3.bf16.msra.mxu1 %v2238_v13  ;;  %v2287_v13 = vld [vmem:[%s2898_s1 + $0x358] sm:$0xff]  }
  0x3e   :  { %2034 = vmatprep.subr.bf16.mxu1 %v2240_v15  ;;  %v2288_v14 = vld [vmem:[%s2898_s1 + $0x3d8] sm:$0xff]  }
  0x3f   :  { %v2289_v15 = vld [vmem:[%s2898_s1 + $0x318] sm:$0xff]  }
  0x40   :  { %2013 = vmatpush3.bf16.msra.mxu0 %v2241_v16  ;;  %v2290_v16 = vld [vmem:[%s2898_s1 + $0x398] sm:$0xff]  }
  0x41   :  { %2042 = vmatprep.subr.bf16.mxu0 %v2243_v19  ;;  %2035 = vmatpush3.bf16.msra.mxu1 %v2242_v17  ;;  %v2291_v17 = vld [vmem:[%s2898_s1 + $0x360] sm:$0xff]  }
  0x42   :  { %2064 = vmatprep.subr.bf16.mxu1 %v2244_v20  ;;  %v2293_v19 = vld [vmem:[%s2898_s1 + $0x320] sm:$0xff]  }
  0x43   :  { %1298 = vmatmul.mubr.bf16.vlgmr.msra.gmra.mrb[4].mxu0 %v333_v18  ;;  %v2292_v18 = vld [vmem:[%s2898_s1 + $0x3e0] sm:$0xff]  }
  0x44   :  { %2043 = vmatpush3.bf16.msra.mxu0 %v2245_v21  ;;  %1338 = vmatmul.mubr.bf16.vlgmr.msra.gmra.mrb[4].mxu1 %v349_v23  ;;  %v2294_v20 = vld [vmem:[%s2898_s1 + $0x3a0] sm:$0xff]   ;;  %v2295_v21 = vld [vmem:[%s2898_s1 + $0x368] sm:$0xff]  }
  0x45   :  { %2044 = vmatprep.subr.bf16.mxu0 %v2247_v24  ;;  %2065 = vmatpush3.bf16.msra.mxu1 %v2246_v22  ;;  %v2296_v22 = vld [vmem:[%s2898_s1 + $0x3e8] sm:$0xff]  }
  0x46   :  { %2066 = vmatprep.subr.bf16.mxu1 %v2248_v25  ;;  %1377 = vmatprep.mubr.bf16.mxu0 %v389_v56  ;;  %v2297_v23 = vld [vmem:[%s2898_s1 + $0x328] sm:$0xff]   ;;  %v2299_v25 = vld [vmem:[%s2898_s1 + $0x370] sm:$0xff]  }
  0x47   :  { %1417 = vmatprep.mubr.bf16.mxu1 %v399_v60  ;;  %v2298_v24 = vld [vmem:[%s2898_s1 + $0x3a8] sm:$0xff]  }
  0x48   :  { %2045 = vmatpush3.bf16.msra.mxu0 %v2249_v26  ;;  %v2300_v26 = vld [vmem:[%s2898_s1 + $0x3f0] sm:$0xff]  }
  0x49   :  { %2046 = vmatprep.subr.bf16.mxu0 %v2251_v28  ;;  %2067 = vmatpush3.bf16.msra.mxu1 %v2250_v27  ;;  %v2301_v27 = vld [vmem:[%s2898_s1 + $0x330] sm:$0xff]   ;;  %v2303_v28 = vld [vmem:[%s2898_s1 + $0x378] sm:$0xff]  }
  0x4a   :  { %2068 = vmatprep.subr.bf16.mxu1 %v2252_v29  ;;  %v2302_v29 = vld [vmem:[%s2898_s1 + $0x3b0] sm:$0xff]  }
  0x4c   :  { %2047 = vmatpush3.bf16.msra.mxu0 %v2253_v30  ;;  %v2304_v30 = vld [vmem:[%s2898_s1 + $0x3f8] sm:$0xff]  }
  0x4d   :  { %2048 = vmatprep.subr.bf16.mxu0 %v2255_v32  ;;  %2069 = vmatpush3.bf16.msra.mxu1 %v2254_v31 }
  0x4e   :  { %2070 = vmatprep.subr.bf16.mxu1 %v2256_v33 }
  0x50   :  { %2049 = vmatpush3.bf16.msra.mxu0 %v2257_v34 }
  0x51   :  { %2050 = vmatprep.subr.bf16.mxu0 %v2259_v36  ;;  %2071 = vmatpush3.bf16.msra.mxu1 %v2258_v35 }
  0x52   :  { %2072 = vmatprep.subr.bf16.mxu1 %v2260_v37 }
  0x54   :  { %2051 = vmatpush3.bf16.msra.mxu0 %v2261_v38 }
  0x55   :  { %2052 = vmatprep.subr.bf16.mxu0 %v2263_v40  ;;  %2073 = vmatpush3.bf16.msra.mxu1 %v2262_v39 }
  0x56   :  { %2074 = vmatprep.subr.bf16.mxu1 %v2264_v42 }
  0x58   :  { %2053 = vmatpush3.bf16.msra.mxu0 %v2265_v43 }
  0x59   :  { %2054 = vmatprep.subr.bf16.mxu0 %v2267_v45  ;;  %2075 = vmatpush3.bf16.msra.mxu1 %v2266_v44 }
  0x5a   :  { %2076 = vmatprep.subr.bf16.mxu1 %v2268_v47 }
  0x5c   :  { %2055 = vmatpush3.bf16.msra.mxu0 %v2269_v50 }
  0x5d   :  { %2056 = vmatprep.subr.bf16.mxu0 %v2271_v54  ;;  %2077 = vmatpush3.bf16.msra.mxu1 %v2270_v51 }
  0x5e   :  { %2078 = vmatprep.subr.bf16.mxu1 %v2272_v55 }
  0x60   :  { %2057 = vmatpush3.bf16.msra.mxu0 %v2273_v58 }
  0x61   :  { %2086 = vmatprep.subr.bf16.mxu0 %v2275_v62  ;;  %2079 = vmatpush3.bf16.msra.mxu1 %v2274_v59 }
  0x62   :  { %2108 = vmatprep.subr.bf16.mxu1 %v2276_v63 }
  0x63   :  { %1378 = vmatmul.mubr.bf16.vlgmr.msra.gmra.mrb[8].mxu0 %v375_v61 }
  0x64   :  { %2087 = vmatpush3.bf16.msra.mxu0 %v2277_v1  ;;  %1457 = vmatprep.mubr.bf16.mxu0 %v396_v0 }
  0x65   :  { %1418 = vmatmul.mubr.bf16.vlgmr.msra.gmra.mrb[8].mxu1 %v397_v3  ;;  %2088 = vmatprep.subr.bf16.mxu0 %v2279_v4 }
  0x66   :  { %2109 = vmatpush3.bf16.msra.mxu1 %v2278_v2  ;;  %1497 = vmatprep.mubr.bf16.mxu1 %v400_v6 }
  0x67   :  { %2110 = vmatprep.subr.bf16.mxu1 %v2280_v5 }
  0x68   :  { %2089 = vmatpush3.bf16.msra.mxu0 %v2281_v7 }
  0x69   :  { %2090 = vmatprep.subr.bf16.mxu0 %v2283_v9 }
  0x6a   :  { %2111 = vmatpush3.bf16.msra.mxu1 %v2282_v8 }
  0x6b   :  { %2112 = vmatprep.subr.bf16.mxu1 %v2284_v10 }
  0x6c   :  { %2091 = vmatpush3.bf16.msra.mxu0 %v2285_v11 }
  0x6d   :  { %2092 = vmatprep.subr.bf16.mxu0 %v2287_v13 }
  0x6e   :  { %2113 = vmatpush3.bf16.msra.mxu1 %v2286_v12 }
  0x6f   :  { %2114 = vmatprep.subr.bf16.mxu1 %v2288_v14 }
  0x70   :  { %2093 = vmatpush3.bf16.msra.mxu0 %v2289_v15 }
  0x71   :  { %2094 = vmatprep.subr.bf16.mxu0 %v2291_v17 }
  0x72   :  { %2115 = vmatpush3.bf16.msra.mxu1 %v2290_v16 }
  0x73   :  { %2116 = vmatprep.subr.bf16.mxu1 %v2292_v18 }
  0x74   :  { %2095 = vmatpush3.bf16.msra.mxu0 %v2293_v19 }
  0x75   :  { %2096 = vmatprep.subr.bf16.mxu0 %v2295_v21 }
  0x76   :  { %2117 = vmatpush3.bf16.msra.mxu1 %v2294_v20 }
  0x77   :  { %2118 = vmatprep.subr.bf16.mxu1 %v2296_v22 }
  0x78   :  { %2097 = vmatpush3.bf16.msra.mxu0 %v2297_v23 }
  0x79   :  { %2098 = vmatprep.subr.bf16.mxu0 %v2299_v25 }
  0x7a   :  { %2119 = vmatpush3.bf16.msra.mxu1 %v2298_v24 }
  0x7b   :  { %2120 = vmatprep.subr.bf16.mxu1 %v2300_v26 }
  0x7c   :  { %17 = vsyncpa [#allocation3], 0  ;;  %2099 = vmatpush3.bf16.msra.mxu0 %v2301_v27  ;;  %v2305_v31 = vld [vmem:[%s2898_s1 + $0x338] sm:$0xff]   ;;  %v382_v32 = vrot.slane %v2706_v53, %v2514_v41  ;;  %v2308_v35 = vld [vmem:[%s2901_s4] sm:$0xff]   ;;  %v2341_v36 = vmov 0.0   ;;  %vm2342_vm0 = vmmov 0  }
  0x7d   :  { %2100 = vmatprep.subr.bf16.mxu0 %v2303_v28  ;;  %v2306_v33 = vld [vmem:[%s2898_s1 + $0x3b8] sm:$0xff]   ;;  %v2309_v41 = vld [vmem:[%s2901_s4 + $0x8] sm:$0xff]   ;;  %v2310_v37 = vld [vmem:[%s2903_s6] sm:$0xff]   ;;  %vm1545_vm1 = vcmask 261120   ;;  %s2343_s26 = smov [#allocation2]  }
  0x7e   :  { %2121 = vmatpush3.bf16.msra.mxu1 %v2302_v29  ;;  %v398_v34 = vcombine.high %v382_v32, %v382_v32  ;;  %v1936_v20 = vld [vmem:[%s2899_s2] ss:$0 sm:$0xff]  ;;  %v2311_v27 = vld [vmem:[%s2903_s6 + $0x8] sm:$0xff]  }
  0x7f   :  { %2122 = vmatprep.subr.bf16.mxu1 %v2304_v30  ;;  %v1937_v23 = vld [vmem:[%s2900_s3] ss:$0 sm:$0xff] }
  0x80   :  { %2101 = vmatpush3.bf16.msra.mxu0 %v2305_v31  ;;  %v2312_v28 = vld [vmem:[%s2905_s8] sm:$0xff]  }
  0x81   :  { %2142 = vmatprep.subr.bf16.mxu0 %v2341_v36  ;;  %v1938_v29 = vld [vmem:[%s2902_s5] ss:$0 sm:$0xff] }
  0x82   :  { %2123 = vmatpush3.bf16.msra.mxu1 %v2306_v33 }
  0x83   :  { %1458 = vmatmul.mubr.bf16.vlgmr.msra.gmra.mrb[12].mxu0 %v382_v32  ;;  %2150 = vmatprep.subr.bf16.mxu1 %v2341_v36 }
  0x84   :  { %2143 = vmatpush3.bf16.msra.mxu0 %v2308_v35  ;;  %2146 = vmatprep.mubr.msk.bf16.mxu0 %vm2342_vm0, %v2341_v36 }
  0x85   :  { %1498 = vmatmul.mubr.bf16.vlgmr.msra.gmra.mrb[12].mxu1 %v398_v34  ;;  %2144 = vmatprep.subr.bf16.mxu0 %v2341_v36 }
  0x86   :  { %2154 = vmatprep.mubr.msk.bf16.mxu1 %vm2342_vm0, %v2341_v36  ;;  %2151 = vmatpush3.bf16.msra.mxu1 %v2310_v37  ;;  %v2313_v37 = vld [vmem:[%s2905_s8 + $0x8] sm:$0xff]  }
  0x87   :  { %2152 = vmatprep.subr.bf16.mxu1 %v2341_v36 }
  0x88   :  { %2145 = vmatpush3.bf16.msra.mxu0 %v2309_v41 }
  0x89   :  { %2158 = vmatprep.subr.bf16.mxu0 %v2341_v36 }
  0x8a   :  { %2153 = vmatpush3.bf16.msra.mxu1 %v2311_v27 }
  0x8b   :  { %2166 = vmatprep.subr.bf16.mxu1 %v2341_v36 }
  0xf6   :  { %v1970_v38 = vpop.f32.mrb[0].mxu0 }
  0xf7   :  { %v1971_v39 = vpop.f32.mrb[1].mxu0  ;;  %v1992_v40 = vpop.f32.mrb[0].mxu1 }
  0xf8   :  { %v1972_v42 = vadd.f32 %v1971_v39, %v1970_v38  ;;  %v1973_v43 = vpop.f32.mrb[2].mxu0  ;;  %v1993_v44 = vpop.f32.mrb[1].mxu1  ;;  %v2314_v38 = vld [vmem:[%s2907_s10] sm:$0xff]  }
  0xf9   :  { %v1974_v45 = vpop.f32.mrb[3].mxu0  ;;  %v1994_v46 = vadd.f32 %v1993_v44, %v1992_v40  ;;  %v1995_v47 = vpop.f32.mrb[2].mxu1  ;;  %v1942_v39 = vld [vmem:[%s2904_s7] ss:$0 sm:$0xff] }
  0xfa   :  { %v1996_v48 = vpop.f32.mrb[3].mxu1 }
  0xfb   :  { %v1260_v49 = vadd.f32 %v1994_v46, %v1972_v42  ;;  %v2315_v48 = vld [vmem:[%s2907_s10 + $0x8] sm:$0xff]   ;;  %s1800_s10 = sshll.u32 %s2343_s26, 4  ;;  %s1801_s10 = int_to_ptr.vmem [resolvable:$true] %s1800_s10 }
  0xfc   :  { %p2321_p1 = scmp.lt.s32.totalorder %s1801_s10, %s1801_s10 }
 0x116   :  { %v2014_v50 = vpop.f32.mrb[4].mxu0 }
 0x117   :  { %v2015_v51 = vpop.f32.mrb[5].mxu0  ;;  %v2036_v52 = vpop.f32.mrb[4].mxu1 }
 0x118   :  { %v2016_v53 = vadd.f32 %v2015_v51, %v2014_v50  ;;  %v2017_v54 = vpop.f32.mrb[6].mxu0  ;;  %v2037_v55 = vpop.f32.mrb[5].mxu1 }
 0x119   :  { %v2018_v56 = vpop.f32.mrb[7].mxu0  ;;  %v2038_v58 = vadd.f32 %v2037_v55, %v2036_v52  ;;  %v2039_v59 = vpop.f32.mrb[6].mxu1 }
 0x11a   :  { %v1300_v57 = vadd.f32 %v2016_v53, %v1260_v49  ;;  %v2040_v60 = vpop.f32.mrb[7].mxu1  ;;  %v1950_v56 = vld [vmem:[%s2908_s11] ss:$0 sm:$0xff] }
 0x11c   :  { %v1340_v61 = vadd.f32 %v2038_v58, %v1300_v57 }
 0x136   :  { %v2058_v62 = vpop.f32.mrb[8].mxu0 }
 0x137   :  { %v2059_v63 = vpop.f32.mrb[9].mxu0 }
 0x138   :  { %v2080_v0 = vpop.f32.mrb[8].mxu1  ;;  %v2060_v1 = vadd.f32 %v2059_v63, %v2058_v62  ;;  %v2061_v2 = vpop.f32.mrb[10].mxu0 }
 0x139   :  { %v2081_v3 = vpop.f32.mrb[9].mxu1  ;;  %v2062_v4 = vpop.f32.mrb[11].mxu0 }
 0x13a   :  { %v1380_v5 = vadd.f32 %v2060_v1, %v1340_v61  ;;  %v2082_v6 = vadd.f32 %v2081_v3, %v2080_v0  ;;  %v2083_v7 = vpop.f32.mrb[10].mxu1 }
 0x13b   :  { %v2084_v8 = vpop.f32.mrb[11].mxu1 }
 0x13c   :  { %v1420_v9 = vadd.f32 %v2082_v6, %v1380_v5 }
 0x156   :  { %v2102_v10 = vpop.f32.mrb[12].mxu0 }
 0x157   :  { %v2103_v11 = vpop.f32.mrb[13].mxu0 }
 0x158   :  { %v2124_v12 = vpop.f32.mrb[12].mxu1  ;;  %v2104_v13 = vadd.f32 %v2103_v11, %v2102_v10  ;;  %v2105_v14 = vpop.f32.mrb[14].mxu0 }
 0x159   :  { %v2125_v15 = vpop.f32.mrb[13].mxu1  ;;  %v2106_v16 = vpop.f32.mrb[15].mxu0 }
 0x15a   :  { %v1460_v17 = vadd.f32 %v2104_v13, %v1420_v9  ;;  %v2126_v18 = vadd.f32 %v2125_v15, %v2124_v12  ;;  %v2127_v19 = vpop.f32.mrb[14].mxu1 }
 0x15b   :  { %v2128_v21 = vpop.f32.mrb[15].mxu1 }
 0x15c   :  { %v1500_v22 = vadd.f32 %v2126_v18, %v1460_v17 }
 0x15e   :  { %v1512_v24 = vmul.f32 %v1936_v20, %v1500_v22 }
 0x160   :  { %v1520_v25 = vadd.f32 %v1937_v23, %v1512_v24 }
 0x162   :  { %v1526_v26 = vpack.c.bf16 %v1520_v25, %v1520_v25 }
 0x164   :  { %2147 = vmatmul.mubr.msk.bf16.vlgmr.msra.gmra.mrb[16].mxu0 %vm1545_vm1, %v1526_v26 }
 0x165   :  { %2162 = vmatprep.mubr.msk.bf16.mxu0 %vm2342_vm0, %v2341_v36  ;;  %2159 = vmatpush3.bf16.msra.mxu0 %v2312_v28 }
 0x166   :  { %2160 = vmatprep.subr.bf16.mxu0 %v2341_v36 }
 0x169   :  { %2161 = vmatpush3.bf16.msra.mxu0 %v2313_v37 }
 0x237   :  { %v1583_v30 = vpop.f32.mrb[16].mxu0 }
 0x238   :  { %v1584_v31 = vadd.f32 %v1938_v29, %v1583_v30  ;;  %v2148_v32 = vpop.f32.mrb[17].mxu0 }
 0x239   :  { %v1586_v33 = vpop.f32.mrb[18].mxu0 }
 0x23a   :  { %v1589_v34 = vmax.f32 %v1584_v31, 0.0  ;;  %v2149_v35 = vpop.f32.mrb[19].mxu0 }
 0x23c   :  { %v1595_v41 = vpack.c.bf16 %v1589_v34, %v1589_v34 }
 0x23e   :  { %2155 = vmatmul.mubr.msk.bf16.vlgmr.msra.gmra.mrb[16].mxu1 %vm1545_vm1, %v1595_v41 }
 0x23f   :  { %2170 = vmatprep.mubr.msk.bf16.mxu1 %vm2342_vm0, %v2341_v36  ;;  %2167 = vmatpush3.bf16.msra.mxu1 %v2314_v38 }
 0x240   :  { %2168 = vmatprep.subr.bf16.mxu1 %v2341_v36  ;;  %v1946_v36 = vld [vmem:[%s2906_s9] ss:$0 sm:$0xff]  ;;  %s2316_s9 = scalar_lea.vmem %s1801_s10, 32 }
 0x241   :  { %p2317_p0 = scmp.ne.s32.totalorder %s1801_s10, %s2316_s9  ;;  %p2322_p2 = scmp.lt.s32.totalorder %s2316_s9, %s2316_s9 }
 0x243   :  { %2169 = vmatpush3.bf16.msra.mxu1 %v2315_v48  ;;  %p2323_p3 = por %p2322_p2, %p2321_p1 }
 0x245   :  { %p2324_p4 = pnand %p2323_p3, %p2317_p0 }
 0x311   :  { %v1651_v40 = vpop.f32.mrb[16].mxu1 }
 0x312   :  { %v1652_v42 = vadd.f32 %v1942_v39, %v1651_v40  ;;  %v2156_v43 = vpop.f32.mrb[17].mxu1 }
 0x313   :  { %v1654_v44 = vpop.f32.mrb[18].mxu1 }
 0x314   :  { %v1657_v45 = vmax.f32 %v1652_v42, 0.0  ;;  %v2157_v46 = vpop.f32.mrb[19].mxu1 }
 0x316   :  { %v1663_v47 = vpack.c.bf16 %v1657_v45, %v1657_v45 }
 0x318   :  { %2163 = vmatmul.mubr.msk.bf16.vlgmr.msra.gmra.mrb[20].mxu0 %vm1545_vm1, %v1663_v47 }
 0x3eb   :  { %v1719_v49 = vpop.f32.mrb[20].mxu0 }
 0x3ec   :  { %v1720_v50 = vadd.f32 %v1946_v36, %v1719_v49  ;;  %v2164_v51 = vpop.f32.mrb[21].mxu0 }
 0x3ed   :  { %v1722_v52 = vpop.f32.mrb[22].mxu0 }
 0x3ee   :  { %v1725_v53 = vmax.f32 %v1720_v50, 0.0  ;;  %v2165_v54 = vpop.f32.mrb[23].mxu0 }
 0x3f0   :  { %v1731_v55 = vpack.c.bf16 %v1725_v53, %v1725_v53 }
 0x3f2   :  { %2171 = vmatmul.mubr.msk.bf16.vlgmr.msra.gmra.mrb[20].mxu1 %vm1545_vm1, %v1731_v55 }
 0x4c5   :  { %v1787_v57 = vpop.f32.mrb[20].mxu1 }
 0x4c6   :  { %v1788_v58 = vadd.f32 %v1950_v56, %v1787_v57  ;;  %v2172_v59 = vpop.f32.mrb[21].mxu1 }
 0x4c7   :  { %v1790_v60 = vpop.f32.mrb[22].mxu1 }
 0x4c8   :  { %1793 = vst [vmem:[#allocation2] sm:$0x3] %v1788_v58  ;;  %v2173_v61 = vpop.f32.mrb[23].mxu1 }
 0x4c9   :  { %2327 = shalt.err (!%p2324_p4)
}
 0x4ca   :  { %s2328_s11 = scalar_lea.hbm %s2909_s12, 32 }
 0x4cb   :  { %p2329_p5 = scmp.ne.s32.totalorder %s2909_s12, %s2328_s11  ;;  %p2332_p6 = scmp.lt.u32.totalorder %s2328_s11, %s2909_s12 }
 0x4cd   :  { %p2334_p7 = pnand %p2332_p6, %p2329_p5 }
 0x4cf   :  { %2337 = shalt.err (!%p2334_p7)
}
 0x4d0   :  { %1803 = dma.vmem_to_hbm [thread:$0]  %s1801_s10, 32, %s2909_s12, [#allocation3]  }
 0x4d1   :  { %2338 = dma.done.wait [#allocation3], 32  }
 0x4d2   :  { %2339 = vsyncadd [#allocation3], 4294967264 }
 0x4d3   :  { %1807 = vsyncpa [#allocation3], 1 }

</bundles_post_ra>
